<compile_context>
chip_gen: v7x
topology: tpu7x:2x2x1
jax: 0.10.0
libtpu: 0.0.40
codegen_flags: <defaults>
</compile_context>

<pallas_src>
import math
import functools

import jax
import jax.numpy as jnp
from jax import lax
from jax.experimental import pallas as pl
from jax.experimental.pallas import tpu as pltpu


def _attention_kernel(q_ref, k_ref, v_ref,
                      wq_ref, bq_ref, wk_ref, bk_ref, wv_ref, bv_ref,
                      wo_ref, bo_ref,
                      o_ref,
                      qp_sc, m_sc, l_sc, acc_sc, slab_sc,
                      *, num_heads: int, head_dim: int):
    kt = pl.program_id(2)
    last_kt = pl.num_programs(2) - 1

    # ---- per-(b, q-tile) init: project the q tile once, split it per head,
    #      reset the online-softmax state.
    @pl.when(kt == 0)
    def _init():
        qp = jnp.dot(q_ref[0], wq_ref[...],
                     preferred_element_type=jnp.float32) + bq_ref[...]
        # 1/sqrt(head_dim) is already folded into wq/bq by the wrapper.
        for h in range(num_heads):
            sl = slice(h * head_dim, (h + 1) * head_dim)
            qp_sc[h] = qp[:, sl].astype(qp_sc.dtype)              # bf16 MXU feed
        m_sc[...] = jnp.full(m_sc.shape, -jnp.inf, m_sc.dtype)
        l_sc[...] = jnp.zeros(l_sc.shape, l_sc.dtype)
        acc_sc[...] = jnp.zeros(acc_sc.shape, acc_sc.dtype)

    # ---- project the current K/V tile (f32 accumulate, bf16 for attention
    #      matmuls).  Full-width projection keeps the MXU contraction deep and
    #      the output lane-dense.  NOTE: recomputed per q-tile; in SAM two-way
    #      attention one of Nq/Nk is tiny, so at most one tiled axis has >1
    #      step and essentially nothing is recomputed.
    kp = (jnp.dot(k_ref[0], wk_ref[...], preferred_element_type=jnp.float32)
          + bk_ref[...]).astype(jnp.bfloat16)
    vp = (jnp.dot(v_ref[0], wv_ref[...], preferred_element_type=jnp.float32)
          + bv_ref[...]).astype(jnp.bfloat16)

    # ---- per-head online-softmax attention against this K/V tile.
    #      num_heads is small & static -> unrolled Python loop.
    for h in range(num_heads):
        sl = slice(h * head_dim, (h + 1) * head_dim)
        qh = qp_sc[h]                              # [TQ, d] bf16 (clean view)
        kh = kp[:, sl]                             # [TK, d] bf16
        vh = vp[:, sl]                             # [TK, d] bf16

        # Contract last dims directly (no kh.T relayout through the XLU).
        s = lax.dot_general(qh, kh, (((1,), (1,)), ((), ())),
                            preferred_element_type=jnp.float32)   # [TQ, TK]

        m_prev = m_sc[h]                                          # [TQ, 1]
        m_new = jnp.maximum(m_prev, jnp.max(s, axis=-1, keepdims=True))
        alpha = jnp.exp(m_prev - m_new)                           # [TQ, 1]
        p = jnp.exp(s - m_new)                                    # un-normalized probs
        l_sc[h] = alpha * l_sc[h] + jnp.sum(p, axis=-1, keepdims=True)
        pv = lax.dot_general(p.astype(jnp.bfloat16), vh, (((1,), (0,)), ((), ())),
                             preferred_element_type=jnp.float32)  # [TQ, d]
        acc_sc[h] = alpha * acc_sc[h] + pv
        m_sc[h] = m_new

    # ---- finalize: deferred softmax normalization, reassemble heads into one
    #      lane-dense [TQ, I] slab (done once per q-tile), then a single
    #      full-depth out-projection.
    @pl.when(kt == last_kt)
    def _finalize():
        for h in range(num_heads):
            sl = slice(h * head_dim, (h + 1) * head_dim)
            inv_l = pl.reciprocal(l_sc[h], approx=True)           # EUP slot, ~free
            slab_sc[:, sl] = acc_sc[h] * inv_l
        out = jnp.dot(slab_sc[...], wo_ref[...],
                      preferred_element_type=jnp.float32) + bo_ref[...]
        o_ref[0] = out.astype(o_ref.dtype)


def _choose_tile(n: int, preferred: int) -> int:
    """Largest divisor of n that is a multiple of 8 and <= preferred.
    Falls back to the full extent when no such divisor exists (keeps the
    (8,128) block constraint satisfied via the full-extent rule)."""
    if n <= preferred:
        return n
    for cand in range(min(preferred, n), 7, -1):
        if n % cand == 0 and cand % 8 == 0:
            return cand
    return n


def attention_two_way_block(q, k, v, params, *, num_heads: int,
                            q_tile: int = 256, k_tile: int = 512):
    """q: [B, Nq, E]; k, v: [B, Nk, E]. Returns [B, Nq, E]."""
    B, Nq, E = q.shape
    _, Nk, _ = k.shape
    wq, bq, wk, bk, wv, bv, wo, bo = params
    internal_dim = wq.shape[1]
    assert internal_dim % num_heads == 0
    head_dim = internal_dim // num_heads

    # Fold the 1/sqrt(head_dim) softmax scale into the q projection once.
    scale = 1.0 / math.sqrt(head_dim)
    wq_s = wq * scale
    bq_s = bq * scale

    TQ = _choose_tile(Nq, q_tile)
    TK = _choose_tile(Nk, k_tile)
    grid = (B, Nq // TQ, Nk // TK)

    kernel = functools.partial(_attention_kernel,
                               num_heads=num_heads, head_dim=head_dim)

    # Weights / biases have constant index maps -> fetched once, not re-DMA'd.
    w_qkv_spec = pl.BlockSpec((E, internal_dim), lambda b, qt, kt: (0, 0))
    w_out_spec = pl.BlockSpec((internal_dim, E), lambda b, qt, kt: (0, 0))
    b_qkv_spec = pl.BlockSpec((1, internal_dim), lambda b, qt, kt: (0, 0))
    b_out_spec = pl.BlockSpec((1, E), lambda b, qt, kt: (0, 0))

    cost = pl.CostEstimate(
        flops=2 * B * (Nq * E * internal_dim            # q proj
                       + 2 * Nk * E * internal_dim      # k/v proj
                       + 2 * Nq * Nk * internal_dim     # QK^T + PV
                       + Nq * internal_dim * E),        # out proj
        transcendentals=B * num_heads * Nq * Nk,
        bytes_accessed=4 * (B * (2 * Nq * E + 2 * Nk * E)
                            + 4 * E * internal_dim + 3 * internal_dim + E),
    )

    return pl.pallas_call(
        kernel,
        out_shape=jax.ShapeDtypeStruct((B, Nq, E), q.dtype),
        grid_spec=pltpu.PrefetchScalarGridSpec(
            num_scalar_prefetch=0,
            grid=grid,
            in_specs=[
                pl.BlockSpec((1, TQ, E), lambda b, qt, kt: (b, qt, 0)),   # q (constant in kt)
                pl.BlockSpec((1, TK, E), lambda b, qt, kt: (b, kt, 0)),   # k (streamed over kt)
                pl.BlockSpec((1, TK, E), lambda b, qt, kt: (b, kt, 0)),   # v (streamed over kt)
                w_qkv_spec, b_qkv_spec,                                   # q_proj (pre-scaled)
                w_qkv_spec, b_qkv_spec,                                   # k_proj
                w_qkv_spec, b_qkv_spec,                                   # v_proj
                w_out_spec, b_out_spec,                                   # out_proj
            ],
            out_specs=pl.BlockSpec((1, TQ, E), lambda b, qt, kt: (b, qt, 0)),
            scratch_shapes=[
                pltpu.VMEM((num_heads, TQ, head_dim), jnp.bfloat16),  # projected q (head-major)
                pltpu.VMEM((num_heads, TQ, 1), jnp.float32),          # running max m (per head)
                pltpu.VMEM((num_heads, TQ, 1), jnp.float32),          # running sum l (per head)
                pltpu.VMEM((num_heads, TQ, head_dim), jnp.float32),   # per-head output accumulator
                pltpu.VMEM((TQ, internal_dim), jnp.float32),          # recombined-heads slab
            ],
        ),
        compiler_params=pltpu.CompilerParams(
            dimension_semantics=("parallel", "parallel", "arbitrary"),
            vmem_limit_bytes=32 * 1024 * 1024,
        ),
        cost_estimate=cost,
    )(q, k, v, wq_s, bq_s, wk, bk, wv, bv, wo, bo)


def init_params(key, embedding_dim: int, internal_dim: int):
    """Deterministic init mirroring the module's _reset_parameters shapes.
    Weights are stored [in, out] (transposed vs nn.Linear.weight)."""
    fan_in = embedding_dim
    fan_out = 3 * internal_dim
    bnd = math.sqrt(6.0 / (fan_in + fan_out))
    k1, k2, k3, k4 = jax.random.split(key, 4)
    wq = jax.random.uniform(k1, (embedding_dim, internal_dim), jnp.float32, -bnd, bnd)
    wk = jax.random.uniform(k2, (embedding_dim, internal_dim), jnp.float32, -bnd, bnd)
    wv = jax.random.uniform(k3, (embedding_dim, internal_dim), jnp.float32, -bnd, bnd)
    bq = jnp.zeros((1, internal_dim), jnp.float32)
    bk = jnp.zeros((1, internal_dim), jnp.float32)
    bv = jnp.zeros((1, internal_dim), jnp.float32)
    bo_bnd = 1.0 / math.sqrt(internal_dim)
    wo = jax.random.uniform(k4, (internal_dim, embedding_dim), jnp.float32, -bo_bnd, bo_bnd)
    bo = jnp.zeros((1, embedding_dim), jnp.float32)
    return (wq, bq, wk, bk, wv, bv, wo, bo)


def reference(q, k, v, params, *, num_heads: int):
    wq, bq, wk, bk, wv, bv, wo, bo = params
    B, Nq, E = q.shape
    internal_dim = wq.shape[1]
    d = internal_dim // num_heads
    qp = q @ wq + bq
    kp = k @ wk + bk
    vp = v @ wv + bv

    def split(x):
        b, n, _ = x.shape
        return x.reshape(b, n, num_heads, d).transpose(0, 2, 1, 3)

    qh, kh, vh = split(qp), split(kp), split(vp)
    attn = jnp.einsum("bhqd,bhkd->bhqk", qh, kh) / math.sqrt(d)
    attn = jax.nn.softmax(attn, axis=-1)
    out = jnp.einsum("bhqk,bhkd->bhqd", attn, vh)
    out = out.transpose(0, 2, 1, 3).reshape(B, Nq, internal_dim)
    return out @ wo + bo


if __name__ == "__main__":
    # Small shapes consistent with the module:
    B = 2
    Nq = 8          # query tokens
    Nk = 16         # key/value tokens
    E = 32          # embedding_dim
    num_heads = 2
    downsample_rate = 1
    internal_dim = E // downsample_rate

    key = jax.random.PRNGKey(0)
    kq, kk, kv, kp = jax.random.split(key, 4)
    q = jax.random.normal(kq, (B, Nq, E), jnp.float32)
    k = jax.random.normal(kk, (B, Nk, E), jnp.float32)
    v = jax.random.normal(kv, (B, Nk, E), jnp.float32)

    params = init_params(kp, E, internal_dim)

    out = attention_two_way_block(q, k, v, params, num_heads=num_heads)
    out = jax.block_until_ready(out)

    ref = reference(q, k, v, params, num_heads=num_heads)
    assert out.shape == (B, Nq, E)
    # bf16 MXU feeds + approximate reciprocal -> looser tolerance than pure f32.
    assert jnp.allclose(out, ref, atol=5e-2, rtol=5e-2), "mismatch vs reference"
    print("KERNEL_OK")
</pallas_src>

<mosaic_0001>
module attributes {stable_mosaic.version = 11 : i64} {
  func.func @_attention_kernel(%arg0: i32, %arg1: i32, %arg2: i32, %arg3: memref<1x8x32xf32, #tpu.memory_space<vmem>>, %arg4: memref<1x16x32xf32, #tpu.memory_space<vmem>>, %arg5: memref<1x16x32xf32, #tpu.memory_space<vmem>>, %arg6: memref<32x32xf32, #tpu.memory_space<vmem>>, %arg7: memref<1x32xf32, #tpu.memory_space<vmem>>, %arg8: memref<32x32xf32, #tpu.memory_space<vmem>>, %arg9: memref<1x32xf32, #tpu.memory_space<vmem>>, %arg10: memref<32x32xf32, #tpu.memory_space<vmem>>, %arg11: memref<1x32xf32, #tpu.memory_space<vmem>>, %arg12: memref<32x32xf32, #tpu.memory_space<vmem>>, %arg13: memref<1x32xf32, #tpu.memory_space<vmem>>, %arg14: memref<1x8x32xf32, #tpu.memory_space<vmem>>, %arg15: memref<2x8x16xbf16, #tpu.memory_space<vmem>>, %arg16: memref<2x8x1xf32, #tpu.memory_space<vmem>>, %arg17: memref<2x8x1xf32, #tpu.memory_space<vmem>>, %arg18: memref<2x8x16xf32, #tpu.memory_space<vmem>>, %arg19: memref<8x32xf32, #tpu.memory_space<vmem>>) attributes {dimension_semantics = [#tpu.dimension_semantics<parallel>, #tpu.dimension_semantics<parallel>, #tpu.dimension_semantics<arbitrary>], iteration_bounds = array<i64: 2, 1, 1>, scalar_prefetch = 0 : i64, scratch_operands = 5 : i64, tpu.core_type = #tpu.core_type<tc>, window_params = [{transform_indices = @transform_0, window_bounds = array<i64: 1, 8, 32>}, {transform_indices = @transform_1, window_bounds = array<i64: 1, 16, 32>}, {transform_indices = @transform_2, window_bounds = array<i64: 1, 16, 32>}, {pipeline_mode = #tpu.pipeline_mode<synchronous>, transform_indices = @transform_3, window_bounds = array<i64: 32, 32>}, {pipeline_mode = #tpu.pipeline_mode<synchronous>, transform_indices = @transform_4, window_bounds = array<i64: 1, 32>}, {pipeline_mode = #tpu.pipeline_mode<synchronous>, transform_indices = @transform_5, window_bounds = array<i64: 32, 32>}, {pipeline_mode = #tpu.pipeline_mode<synchronous>, transform_indices = @transform_6, window_bounds = array<i64: 1, 32>}, {pipeline_mode = #tpu.pipeline_mode<synchronous>, transform_indices = @transform_7, window_bounds = array<i64: 32, 32>}, {pipeline_mode = #tpu.pipeline_mode<synchronous>, transform_indices = @transform_8, window_bounds = array<i64: 1, 32>}, {pipeline_mode = #tpu.pipeline_mode<synchronous>, transform_indices = @transform_9, window_bounds = array<i64: 32, 32>}, {pipeline_mode = #tpu.pipeline_mode<synchronous>, transform_indices = @transform_10, window_bounds = array<i64: 1, 32>}, {transform_indices = @transform_11, window_bounds = array<i64: 1, 8, 32>}]} {
    %c0_i32 = arith.constant 0 : i32
    %0 = arith.cmpi eq, %arg2, %c0_i32 : i32
    %1 = arith.extui %0 : i1 to i32
    %c0_i32_0 = arith.constant 0 : i32
    %2 = arith.cmpi ne, %1, %c0_i32_0 : i32
    scf.if %2 {
      %c0_66 = arith.constant 0 : index
      %c0_67 = arith.constant 0 : index
      %c0_68 = arith.constant 0 : index
      %96 = vector.load %arg3[%c0_66, %c0_67, %c0_68] : memref<1x8x32xf32, #tpu.memory_space<vmem>>, vector<1x8x32xf32>
      %97 = vector.shape_cast %96 : vector<1x8x32xf32> to vector<8x32xf32>
      %c0_69 = arith.constant 0 : index
      %c0_70 = arith.constant 0 : index
      %98 = vector.load %arg6[%c0_69, %c0_70] : memref<32x32xf32, #tpu.memory_space<vmem>>, vector<32x32xf32>
      %cst_71 = arith.constant dense<0.000000e+00> : vector<8x32xf32>
      %99 = tpu.matmul %97, %98, %cst_71 {dimension_numbers = #tpu.dot_dimension_numbers<[1], [0], [0], [1], [0, 0, 1, 1], [], []>} : vector<8x32xf32>, vector<32x32xf32>, vector<8x32xf32> -> vector<8x32xf32>
      %c0_72 = arith.constant 0 : index
      %c0_73 = arith.constant 0 : index
      %100 = vector.load %arg7[%c0_72, %c0_73] : memref<1x32xf32, #tpu.memory_space<vmem>>, vector<1x32xf32>
      %101 = vector.broadcast %100 : vector<1x32xf32> to vector<8x32xf32>
      %102 = arith.addf %99, %101 : vector<8x32xf32>
      %103 = vector.extract_strided_slice %102 {offsets = [0, 0], sizes = [8, 16], strides = [1, 1]} : vector<8x32xf32> to vector<8x16xf32>
      %104 = arith.truncf %103 : vector<8x16xf32> to vector<8x16xbf16>
      %c0_74 = arith.constant 0 : index
      %c0_75 = arith.constant 0 : index
      %c0_76 = arith.constant 0 : index
      %105 = vector.load %arg15[%c0_74, %c0_75, %c0_76] : memref<2x8x16xbf16, #tpu.memory_space<vmem>>, vector<1x8x16xbf16>
      %106 = vector.shape_cast %105 : vector<1x8x16xbf16> to vector<8x16xbf16>
      %107 = vector.shape_cast %104 : vector<8x16xbf16> to vector<1x8x16xbf16>
      tpu.vector_store %arg15[%c0_74, %c0_75, %c0_76], %107 {strides = array<i32>} : memref<2x8x16xbf16, #tpu.memory_space<vmem>>, vector<1x8x16xbf16>,
      %108 = vector.extract_strided_slice %102 {offsets = [0, 16], sizes = [8, 16], strides = [1, 1]} : vector<8x32xf32> to vector<8x16xf32>
      %109 = arith.truncf %108 : vector<8x16xf32> to vector<8x16xbf16>
      %c1_77 = arith.constant 1 : index
      %c0_78 = arith.constant 0 : index
      %c0_79 = arith.constant 0 : index
      %110 = vector.load %arg15[%c1_77, %c0_78, %c0_79] : memref<2x8x16xbf16, #tpu.memory_space<vmem>>, vector<1x8x16xbf16>
      %111 = vector.shape_cast %110 : vector<1x8x16xbf16> to vector<8x16xbf16>
      %112 = vector.shape_cast %109 : vector<8x16xbf16> to vector<1x8x16xbf16>
      tpu.vector_store %arg15[%c1_77, %c0_78, %c0_79], %112 {strides = array<i32>} : memref<2x8x16xbf16, #tpu.memory_space<vmem>>, vector<1x8x16xbf16>,
      %cst_80 = arith.constant 0xFF800000 : f32
      %113 = vector.broadcast %cst_80 : f32 to vector<2x8x1xf32>
      %c0_81 = arith.constant 0 : index
      %c0_82 = arith.constant 0 : index
      %c0_83 = arith.constant 0 : index
      %114 = vector.load %arg16[%c0_81, %c0_82, %c0_83] : memref<2x8x1xf32, #tpu.memory_space<vmem>>, vector<2x8x1xf32>
      tpu.vector_store %arg16[%c0_81, %c0_82, %c0_83], %113 {strides = array<i32>} : memref<2x8x1xf32, #tpu.memory_space<vmem>>, vector<2x8x1xf32>,
      %cst_84 = arith.constant 0.000000e+00 : f32
      %115 = vector.broadcast %cst_84 : f32 to vector<2x8x1xf32>
      %c0_85 = arith.constant 0 : index
      %c0_86 = arith.constant 0 : index
      %c0_87 = arith.constant 0 : index
      %116 = vector.load %arg17[%c0_85, %c0_86, %c0_87] : memref<2x8x1xf32, #tpu.memory_space<vmem>>, vector<2x8x1xf32>
      tpu.vector_store %arg17[%c0_85, %c0_86, %c0_87], %115 {strides = array<i32>} : memref<2x8x1xf32, #tpu.memory_space<vmem>>, vector<2x8x1xf32>,
      %cst_88 = arith.constant 0.000000e+00 : f32
      %117 = vector.broadcast %cst_88 : f32 to vector<2x8x16xf32>
      %c0_89 = arith.constant 0 : index
      %c0_90 = arith.constant 0 : index
      %c0_91 = arith.constant 0 : index
      %118 = vector.load %arg18[%c0_89, %c0_90, %c0_91] : memref<2x8x16xf32, #tpu.memory_space<vmem>>, vector<2x8x16xf32>
      tpu.vector_store %arg18[%c0_89, %c0_90, %c0_91], %117 {strides = array<i32>} : memref<2x8x16xf32, #tpu.memory_space<vmem>>, vector<2x8x16xf32>,
    } else {
    }
    %c0 = arith.constant 0 : index
    %c0_1 = arith.constant 0 : index
    %c0_2 = arith.constant 0 : index
    %3 = vector.load %arg4[%c0, %c0_1, %c0_2] : memref<1x16x32xf32, #tpu.memory_space<vmem>>, vector<1x16x32xf32>
    %4 = vector.shape_cast %3 : vector<1x16x32xf32> to vector<16x32xf32>
    %c0_3 = arith.constant 0 : index
    %c0_4 = arith.constant 0 : index
    %5 = vector.load %arg8[%c0_3, %c0_4] : memref<32x32xf32, #tpu.memory_space<vmem>>, vector<32x32xf32>
    %cst = arith.constant dense<0.000000e+00> : vector<16x32xf32>
    %6 = tpu.matmul %4, %5, %cst {dimension_numbers = #tpu.dot_dimension_numbers<[1], [0], [0], [1], [0, 0, 1, 1], [], []>} : vector<16x32xf32>, vector<32x32xf32>, vector<16x32xf32> -> vector<16x32xf32>
    %c0_5 = arith.constant 0 : index
    %c0_6 = arith.constant 0 : index
    %7 = vector.load %arg9[%c0_5, %c0_6] : memref<1x32xf32, #tpu.memory_space<vmem>>, vector<1x32xf32>
    %8 = vector.broadcast %7 : vector<1x32xf32> to vector<16x32xf32>
    %9 = arith.addf %6, %8 : vector<16x32xf32>
    %10 = arith.truncf %9 : vector<16x32xf32> to vector<16x32xbf16>
    %c0_7 = arith.constant 0 : index
    %c0_8 = arith.constant 0 : index
    %c0_9 = arith.constant 0 : index
    %11 = vector.load %arg5[%c0_7, %c0_8, %c0_9] : memref<1x16x32xf32, #tpu.memory_space<vmem>>, vector<1x16x32xf32>
    %12 = vector.shape_cast %11 : vector<1x16x32xf32> to vector<16x32xf32>
    %c0_10 = arith.constant 0 : index
    %c0_11 = arith.constant 0 : index
    %13 = vector.load %arg10[%c0_10, %c0_11] : memref<32x32xf32, #tpu.memory_space<vmem>>, vector<32x32xf32>
    %cst_12 = arith.constant dense<0.000000e+00> : vector<16x32xf32>
    %14 = tpu.matmul %12, %13, %cst_12 {dimension_numbers = #tpu.dot_dimension_numbers<[1], [0], [0], [1], [0, 0, 1, 1], [], []>} : vector<16x32xf32>, vector<32x32xf32>, vector<16x32xf32> -> vector<16x32xf32>
    %c0_13 = arith.constant 0 : index
    %c0_14 = arith.constant 0 : index
    %15 = vector.load %arg11[%c0_13, %c0_14] : memref<1x32xf32, #tpu.memory_space<vmem>>, vector<1x32xf32>
    %16 = vector.broadcast %15 : vector<1x32xf32> to vector<16x32xf32>
    %17 = arith.addf %14, %16 : vector<16x32xf32>
    %18 = arith.truncf %17 : vector<16x32xf32> to vector<16x32xbf16>
    %c0_15 = arith.constant 0 : index
    %c0_16 = arith.constant 0 : index
    %c0_17 = arith.constant 0 : index
    %19 = vector.load %arg15[%c0_15, %c0_16, %c0_17] : memref<2x8x16xbf16, #tpu.memory_space<vmem>>, vector<1x8x16xbf16>
    %20 = vector.shape_cast %19 : vector<1x8x16xbf16> to vector<8x16xbf16>
    %21 = vector.extract_strided_slice %10 {offsets = [0, 0], sizes = [16, 16], strides = [1, 1]} : vector<16x32xbf16> to vector<16x16xbf16>
    %22 = vector.extract_strided_slice %18 {offsets = [0, 0], sizes = [16, 16], strides = [1, 1]} : vector<16x32xbf16> to vector<16x16xbf16>
    %cst_18 = arith.constant dense<0.000000e+00> : vector<8x16xf32>
    %23 = tpu.matmul %20, %21, %cst_18 {dimension_numbers = #tpu.dot_dimension_numbers<[1], [1], [0], [0], [0, 0, 1, 0], [], []>} : vector<8x16xbf16>, vector<16x16xbf16>, vector<8x16xf32> -> vector<8x16xf32>
    %c0_19 = arith.constant 0 : index
    %c0_20 = arith.constant 0 : index
    %c0_21 = arith.constant 0 : index
    %24 = vector.load %arg16[%c0_19, %c0_20, %c0_21] : memref<2x8x1xf32, #tpu.memory_space<vmem>>, vector<1x8x1xf32>
    %25 = vector.shape_cast %24 : vector<1x8x1xf32> to vector<8x1xf32>
    %cst_22 = arith.constant dense<0xFF800000> : vector<8xf32>
    %26 = vector.multi_reduction <maximumf>, %23, %cst_22 [1] : vector<8x16xf32> to vector<8xf32>
    %27 = vector.shape_cast %26 : vector<8xf32> to vector<8x1xf32>
    %28 = arith.maximumf %25, %27 : vector<8x1xf32>
    %29 = arith.subf %25, %28 : vector<8x1xf32>
    %30 = math.exp %29 : vector<8x1xf32>
    %31 = vector.broadcast %28 : vector<8x1xf32> to vector<8x16xf32>
    %32 = arith.subf %23, %31 : vector<8x16xf32>
    %33 = math.exp %32 : vector<8x16xf32>
    %c0_23 = arith.constant 0 : index
    %c0_24 = arith.constant 0 : index
    %c0_25 = arith.constant 0 : index
    %34 = vector.load %arg17[%c0_23, %c0_24, %c0_25] : memref<2x8x1xf32, #tpu.memory_space<vmem>>, vector<1x8x1xf32>
    %35 = vector.shape_cast %34 : vector<1x8x1xf32> to vector<8x1xf32>
    %36 = arith.mulf %30, %35 : vector<8x1xf32>
    %cst_26 = arith.constant dense<0.000000e+00> : vector<8xf32>
    %37 = vector.multi_reduction <add>, %33, %cst_26 [1] : vector<8x16xf32> to vector<8xf32>
    %38 = vector.shape_cast %37 : vector<8xf32> to vector<8x1xf32>
    %39 = arith.addf %36, %38 : vector<8x1xf32>
    %c0_27 = arith.constant 0 : index
    %c0_28 = arith.constant 0 : index
    %c0_29 = arith.constant 0 : index
    %40 = vector.load %arg17[%c0_27, %c0_28, %c0_29] : memref<2x8x1xf32, #tpu.memory_space<vmem>>, vector<1x8x1xf32>
    %41 = vector.shape_cast %40 : vector<1x8x1xf32> to vector<8x1xf32>
    %42 = vector.shape_cast %39 : vector<8x1xf32> to vector<1x8x1xf32>
    tpu.vector_store %arg17[%c0_27, %c0_28, %c0_29], %42 {strides = array<i32>} : memref<2x8x1xf32, #tpu.memory_space<vmem>>, vector<1x8x1xf32>,
    %43 = arith.truncf %33 : vector<8x16xf32> to vector<8x16xbf16>
    %cst_30 = arith.constant dense<0.000000e+00> : vector<8x16xf32>
    %44 = tpu.matmul %43, %22, %cst_30 {dimension_numbers = #tpu.dot_dimension_numbers<[1], [0], [0], [1], [0, 0, 1, 1], [], []>} : vector<8x16xbf16>, vector<16x16xbf16>, vector<8x16xf32> -> vector<8x16xf32>
    %c0_31 = arith.constant 0 : index
    %c0_32 = arith.constant 0 : index
    %c0_33 = arith.constant 0 : index
    %45 = vector.load %arg18[%c0_31, %c0_32, %c0_33] : memref<2x8x16xf32, #tpu.memory_space<vmem>>, vector<1x8x16xf32>
    %46 = vector.shape_cast %45 : vector<1x8x16xf32> to vector<8x16xf32>
    %47 = vector.broadcast %30 : vector<8x1xf32> to vector<8x16xf32>
    %48 = arith.mulf %47, %46 : vector<8x16xf32>
    %49 = arith.addf %48, %44 : vector<8x16xf32>
    %c0_34 = arith.constant 0 : index
    %c0_35 = arith.constant 0 : index
    %c0_36 = arith.constant 0 : index
    %50 = vector.load %arg18[%c0_34, %c0_35, %c0_36] : memref<2x8x16xf32, #tpu.memory_space<vmem>>, vector<1x8x16xf32>
    %51 = vector.shape_cast %50 : vector<1x8x16xf32> to vector<8x16xf32>
    %52 = vector.shape_cast %49 : vector<8x16xf32> to vector<1x8x16xf32>
    tpu.vector_store %arg18[%c0_34, %c0_35, %c0_36], %52 {strides = array<i32>} : memref<2x8x16xf32, #tpu.memory_space<vmem>>, vector<1x8x16xf32>,
    %c0_37 = arith.constant 0 : index
    %c0_38 = arith.constant 0 : index
    %c0_39 = arith.constant 0 : index
    %53 = vector.load %arg16[%c0_37, %c0_38, %c0_39] : memref<2x8x1xf32, #tpu.memory_space<vmem>>, vector<1x8x1xf32>
    %54 = vector.shape_cast %53 : vector<1x8x1xf32> to vector<8x1xf32>
    %55 = vector.shape_cast %28 : vector<8x1xf32> to vector<1x8x1xf32>
    tpu.vector_store %arg16[%c0_37, %c0_38, %c0_39], %55 {strides = array<i32>} : memref<2x8x1xf32, #tpu.memory_space<vmem>>, vector<1x8x1xf32>,
    %c1 = arith.constant 1 : index
    %c0_40 = arith.constant 0 : index
    %c0_41 = arith.constant 0 : index
    %56 = vector.load %arg15[%c1, %c0_40, %c0_41] : memref<2x8x16xbf16, #tpu.memory_space<vmem>>, vector<1x8x16xbf16>
    %57 = vector.shape_cast %56 : vector<1x8x16xbf16> to vector<8x16xbf16>
    %58 = vector.extract_strided_slice %10 {offsets = [0, 16], sizes = [16, 16], strides = [1, 1]} : vector<16x32xbf16> to vector<16x16xbf16>
    %59 = vector.extract_strided_slice %18 {offsets = [0, 16], sizes = [16, 16], strides = [1, 1]} : vector<16x32xbf16> to vector<16x16xbf16>
    %cst_42 = arith.constant dense<0.000000e+00> : vector<8x16xf32>
    %60 = tpu.matmul %57, %58, %cst_42 {dimension_numbers = #tpu.dot_dimension_numbers<[1], [1], [0], [0], [0, 0, 1, 0], [], []>} : vector<8x16xbf16>, vector<16x16xbf16>, vector<8x16xf32> -> vector<8x16xf32>
    %c1_43 = arith.constant 1 : index
    %c0_44 = arith.constant 0 : index
    %c0_45 = arith.constant 0 : index
    %61 = vector.load %arg16[%c1_43, %c0_44, %c0_45] : memref<2x8x1xf32, #tpu.memory_space<vmem>>, vector<1x8x1xf32>
    %62 = vector.shape_cast %61 : vector<1x8x1xf32> to vector<8x1xf32>
    %cst_46 = arith.constant dense<0xFF800000> : vector<8xf32>
    %63 = vector.multi_reduction <maximumf>, %60, %cst_46 [1] : vector<8x16xf32> to vector<8xf32>
    %64 = vector.shape_cast %63 : vector<8xf32> to vector<8x1xf32>
    %65 = arith.maximumf %62, %64 : vector<8x1xf32>
    %66 = arith.subf %62, %65 : vector<8x1xf32>
    %67 = math.exp %66 : vector<8x1xf32>
    %68 = vector.broadcast %65 : vector<8x1xf32> to vector<8x16xf32>
    %69 = arith.subf %60, %68 : vector<8x16xf32>
    %70 = math.exp %69 : vector<8x16xf32>
    %c1_47 = arith.constant 1 : index
    %c0_48 = arith.constant 0 : index
    %c0_49 = arith.constant 0 : index
    %71 = vector.load %arg17[%c1_47, %c0_48, %c0_49] : memref<2x8x1xf32, #tpu.memory_space<vmem>>, vector<1x8x1xf32>
    %72 = vector.shape_cast %71 : vector<1x8x1xf32> to vector<8x1xf32>
    %73 = arith.mulf %67, %72 : vector<8x1xf32>
    %cst_50 = arith.constant dense<0.000000e+00> : vector<8xf32>
    %74 = vector.multi_reduction <add>, %70, %cst_50 [1] : vector<8x16xf32> to vector<8xf32>
    %75 = vector.shape_cast %74 : vector<8xf32> to vector<8x1xf32>
    %76 = arith.addf %73, %75 : vector<8x1xf32>
    %c1_51 = arith.constant 1 : index
    %c0_52 = arith.constant 0 : index
    %c0_53 = arith.constant 0 : index
    %77 = vector.load %arg17[%c1_51, %c0_52, %c0_53] : memref<2x8x1xf32, #tpu.memory_space<vmem>>, vector<1x8x1xf32>
    %78 = vector.shape_cast %77 : vector<1x8x1xf32> to vector<8x1xf32>
    %79 = vector.shape_cast %76 : vector<8x1xf32> to vector<1x8x1xf32>
    tpu.vector_store %arg17[%c1_51, %c0_52, %c0_53], %79 {strides = array<i32>} : memref<2x8x1xf32, #tpu.memory_space<vmem>>, vector<1x8x1xf32>,
    %80 = arith.truncf %70 : vector<8x16xf32> to vector<8x16xbf16>
    %cst_54 = arith.constant dense<0.000000e+00> : vector<8x16xf32>
    %81 = tpu.matmul %80, %59, %cst_54 {dimension_numbers = #tpu.dot_dimension_numbers<[1], [0], [0], [1], [0, 0, 1, 1], [], []>} : vector<8x16xbf16>, vector<16x16xbf16>, vector<8x16xf32> -> vector<8x16xf32>
    %c1_55 = arith.constant 1 : index
    %c0_56 = arith.constant 0 : index
    %c0_57 = arith.constant 0 : index
    %82 = vector.load %arg18[%c1_55, %c0_56, %c0_57] : memref<2x8x16xf32, #tpu.memory_space<vmem>>, vector<1x8x16xf32>
    %83 = vector.shape_cast %82 : vector<1x8x16xf32> to vector<8x16xf32>
    %84 = vector.broadcast %67 : vector<8x1xf32> to vector<8x16xf32>
    %85 = arith.mulf %84, %83 : vector<8x16xf32>
    %86 = arith.addf %85, %81 : vector<8x16xf32>
    %c1_58 = arith.constant 1 : index
    %c0_59 = arith.constant 0 : index
    %c0_60 = arith.constant 0 : index
    %87 = vector.load %arg18[%c1_58, %c0_59, %c0_60] : memref<2x8x16xf32, #tpu.memory_space<vmem>>, vector<1x8x16xf32>
    %88 = vector.shape_cast %87 : vector<1x8x16xf32> to vector<8x16xf32>
    %89 = vector.shape_cast %86 : vector<8x16xf32> to vector<1x8x16xf32>
    tpu.vector_store %arg18[%c1_58, %c0_59, %c0_60], %89 {strides = array<i32>} : memref<2x8x16xf32, #tpu.memory_space<vmem>>, vector<1x8x16xf32>,
    %c1_61 = arith.constant 1 : index
    %c0_62 = arith.constant 0 : index
    %c0_63 = arith.constant 0 : index
    %90 = vector.load %arg16[%c1_61, %c0_62, %c0_63] : memref<2x8x1xf32, #tpu.memory_space<vmem>>, vector<1x8x1xf32>
    %91 = vector.shape_cast %90 : vector<1x8x1xf32> to vector<8x1xf32>
    %92 = vector.shape_cast %65 : vector<8x1xf32> to vector<1x8x1xf32>
    tpu.vector_store %arg16[%c1_61, %c0_62, %c0_63], %92 {strides = array<i32>} : memref<2x8x1xf32, #tpu.memory_space<vmem>>, vector<1x8x1xf32>,
    %c0_i32_64 = arith.constant 0 : i32
    %93 = arith.cmpi eq, %arg2, %c0_i32_64 : i32
    %94 = arith.extui %93 : i1 to i32
    %c0_i32_65 = arith.constant 0 : i32
    %95 = arith.cmpi ne, %94, %c0_i32_65 : i32
    scf.if %95 {
      %c0_66 = arith.constant 0 : index
      %c0_67 = arith.constant 0 : index
      %c0_68 = arith.constant 0 : index
      %96 = vector.load %arg17[%c0_66, %c0_67, %c0_68] : memref<2x8x1xf32, #tpu.memory_space<vmem>>, vector<1x8x1xf32>
      %97 = vector.shape_cast %96 : vector<1x8x1xf32> to vector<8x1xf32>
      %98 = tpu.reciprocal %97 {approx = true} : vector<8x1xf32> -> vector<8x1xf32>
      %c0_69 = arith.constant 0 : index
      %c0_70 = arith.constant 0 : index
      %c0_71 = arith.constant 0 : index
      %99 = vector.load %arg18[%c0_69, %c0_70, %c0_71] : memref<2x8x16xf32, #tpu.memory_space<vmem>>, vector<1x8x16xf32>
      %100 = vector.shape_cast %99 : vector<1x8x16xf32> to vector<8x16xf32>
      %101 = vector.broadcast %98 : vector<8x1xf32> to vector<8x16xf32>
      %102 = arith.mulf %100, %101 : vector<8x16xf32>
      %c0_72 = arith.constant 0 : index
      %c0_73 = arith.constant 0 : index
      %103 = vector.load %arg19[%c0_72, %c0_73] : memref<8x32xf32, #tpu.memory_space<vmem>>, vector<8x16xf32>
      tpu.vector_store %arg19[%c0_72, %c0_73], %102 {strides = array<i32>} : memref<8x32xf32, #tpu.memory_space<vmem>>, vector<8x16xf32>,
      %c1_74 = arith.constant 1 : index
      %c0_75 = arith.constant 0 : index
      %c0_76 = arith.constant 0 : index
      %104 = vector.load %arg17[%c1_74, %c0_75, %c0_76] : memref<2x8x1xf32, #tpu.memory_space<vmem>>, vector<1x8x1xf32>
      %105 = vector.shape_cast %104 : vector<1x8x1xf32> to vector<8x1xf32>
      %106 = tpu.reciprocal %105 {approx = true} : vector<8x1xf32> -> vector<8x1xf32>
      %c1_77 = arith.constant 1 : index
      %c0_78 = arith.constant 0 : index
      %c0_79 = arith.constant 0 : index
      %107 = vector.load %arg18[%c1_77, %c0_78, %c0_79] : memref<2x8x16xf32, #tpu.memory_space<vmem>>, vector<1x8x16xf32>
      %108 = vector.shape_cast %107 : vector<1x8x16xf32> to vector<8x16xf32>
      %109 = vector.broadcast %106 : vector<8x1xf32> to vector<8x16xf32>
      %110 = arith.mulf %108, %109 : vector<8x16xf32>
      %c0_80 = arith.constant 0 : index
      %c16 = arith.constant 16 : index
      %111 = vector.load %arg19[%c0_80, %c16] : memref<8x32xf32, #tpu.memory_space<vmem>>, vector<8x16xf32>
      tpu.vector_store %arg19[%c0_80, %c16], %110 {strides = array<i32>} : memref<8x32xf32, #tpu.memory_space<vmem>>, vector<8x16xf32>,
      %c0_81 = arith.constant 0 : index
      %c0_82 = arith.constant 0 : index
      %112 = vector.load %arg19[%c0_81, %c0_82] : memref<8x32xf32, #tpu.memory_space<vmem>>, vector<8x32xf32>
      %c0_83 = arith.constant 0 : index
      %c0_84 = arith.constant 0 : index
      %113 = vector.load %arg12[%c0_83, %c0_84] : memref<32x32xf32, #tpu.memory_space<vmem>>, vector<32x32xf32>
      %cst_85 = arith.constant dense<0.000000e+00> : vector<8x32xf32>
      %114 = tpu.matmul %112, %113, %cst_85 {dimension_numbers = #tpu.dot_dimension_numbers<[1], [0], [0], [1], [0, 0, 1, 1], [], []>} : vector<8x32xf32>, vector<32x32xf32>, vector<8x32xf32> -> vector<8x32xf32>
      %c0_86 = arith.constant 0 : index
      %c0_87 = arith.constant 0 : index
      %115 = vector.load %arg13[%c0_86, %c0_87] : memref<1x32xf32, #tpu.memory_space<vmem>>, vector<1x32xf32>
      %116 = vector.broadcast %115 : vector<1x32xf32> to vector<8x32xf32>
      %117 = arith.addf %114, %116 : vector<8x32xf32>
      %c0_88 = arith.constant 0 : index
      %c0_89 = arith.constant 0 : index
      %c0_90 = arith.constant 0 : index
      %118 = vector.load %arg14[%c0_88, %c0_89, %c0_90] : memref<1x8x32xf32, #tpu.memory_space<vmem>>, vector<1x8x32xf32>
      %119 = vector.shape_cast %118 : vector<1x8x32xf32> to vector<8x32xf32>
      %120 = vector.shape_cast %117 : vector<8x32xf32> to vector<1x8x32xf32>
      tpu.vector_store %arg14[%c0_88, %c0_89, %c0_90], %120 {strides = array<i32>} : memref<1x8x32xf32, #tpu.memory_space<vmem>>, vector<1x8x32xf32>,
    } else {
    }
    return
  }
  func.func @transform_0(%arg0: i32, %arg1: i32, %arg2: i32) -> (i32, i32, i32) {
    %c0_i32 = arith.constant 0 : i32
    %c0_i32_0 = arith.constant 0 : i32
    return %arg0, %arg1, %c0_i32 : i32, i32, i32
  }
  func.func @transform_1(%arg0: i32, %arg1: i32, %arg2: i32) -> (i32, i32, i32) {
    %c0_i32 = arith.constant 0 : i32
    %c0_i32_0 = arith.constant 0 : i32
    return %arg0, %arg2, %c0_i32 : i32, i32, i32
  }
  func.func @transform_2(%arg0: i32, %arg1: i32, %arg2: i32) -> (i32, i32, i32) {
    %c0_i32 = arith.constant 0 : i32
    %c0_i32_0 = arith.constant 0 : i32
    return %arg0, %arg2, %c0_i32 : i32, i32, i32
  }
  func.func @transform_3(%arg0: i32, %arg1: i32, %arg2: i32) -> (i32, i32) {
    %c0_i32 = arith.constant 0 : i32
    %c0_i32_0 = arith.constant 0 : i32
    %c0_i32_1 = arith.constant 0 : i32
    return %c0_i32, %c0_i32_0 : i32, i32
  }
  func.func @transform_4(%arg0: i32, %arg1: i32, %arg2: i32) -> (i32, i32) {
    %c0_i32 = arith.constant 0 : i32
    %c0_i32_0 = arith.constant 0 : i32
    %c0_i32_1 = arith.constant 0 : i32
    return %c0_i32, %c0_i32_0 : i32, i32
  }
  func.func @transform_5(%arg0: i32, %arg1: i32, %arg2: i32) -> (i32, i32) {
    %c0_i32 = arith.constant 0 : i32
    %c0_i32_0 = arith.constant 0 : i32
    %c0_i32_1 = arith.constant 0 : i32
    return %c0_i32, %c0_i32_0 : i32, i32
  }
  func.func @transform_6(%arg0: i32, %arg1: i32, %arg2: i32) -> (i32, i32) {
    %c0_i32 = arith.constant 0 : i32
    %c0_i32_0 = arith.constant 0 : i32
    %c0_i32_1 = arith.constant 0 : i32
    return %c0_i32, %c0_i32_0 : i32, i32
  }
  func.func @transform_7(%arg0: i32, %arg1: i32, %arg2: i32) -> (i32, i32) {
    %c0_i32 = arith.constant 0 : i32
    %c0_i32_0 = arith.constant 0 : i32
    %c0_i32_1 = arith.constant 0 : i32
    return %c0_i32, %c0_i32_0 : i32, i32
  }
  func.func @transform_8(%arg0: i32, %arg1: i32, %arg2: i32) -> (i32, i32) {
    %c0_i32 = arith.constant 0 : i32
    %c0_i32_0 = arith.constant 0 : i32
    %c0_i32_1 = arith.constant 0 : i32
    return %c0_i32, %c0_i32_0 : i32, i32
  }
  func.func @transform_9(%arg0: i32, %arg1: i32, %arg2: i32) -> (i32, i32) {
    %c0_i32 = arith.constant 0 : i32
    %c0_i32_0 = arith.constant 0 : i32
    %c0_i32_1 = arith.constant 0 : i32
    return %c0_i32, %c0_i32_0 : i32, i32
  }
  func.func @transform_10(%arg0: i32, %arg1: i32, %arg2: i32) -> (i32, i32) {
    %c0_i32 = arith.constant 0 : i32
    %c0_i32_0 = arith.constant 0 : i32
    %c0_i32_1 = arith.constant 0 : i32
    return %c0_i32, %c0_i32_0 : i32, i32
  }
  func.func @transform_11(%arg0: i32, %arg1: i32, %arg2: i32) -> (i32, i32, i32) {
    %c0_i32 = arith.constant 0 : i32
    %c0_i32_0 = arith.constant 0 : i32
    return %arg0, %arg1, %c0_i32 : i32, i32, i32
  }
}

</mosaic_0001>

<bundles_post_ra>
// kernel: tpu_custom_call.1
= control target key start
LH: loop header
LB: loop body
LE: loop exit
PB: predicated region body
PF: predicated region fallthrough
CT: control target
= control target key end

     0   :  { %s2590_s0 = inlined_call_operand.hbm [shape: f32[2,8,32], index: 0, kind: input, shape index: {}]   ;;  %s2591_s1 = inlined_call_operand.hbm [shape: f32[2,16,32], index: 1, kind: input, shape index: {}]   ;;  %s2592_s2 = inlined_call_operand.hbm [shape: f32[2,16,32], index: 2, kind: input, shape index: {}]   ;;  %s2593_s3 = inlined_call_operand.hbm [shape: f32[32,32], index: 3, kind: input, shape index: {}]   ;;  %s2594_s4 = inlined_call_operand.vmem [shape: f32[1,32], index: 4, kind: input, shape index: {}]   ;;  %s2595_s5 = inlined_call_operand.hbm [shape: f32[32,32], index: 5, kind: input, shape index: {}]   ;;  %s2596_s6 = inlined_call_operand.vmem [shape: f32[1,32], index: 6, kind: input, shape index: {}]   ;;  %s2597_s7 = inlined_call_operand.hbm [shape: f32[32,32], index: 7, kind: input, shape index: {}]   ;;  %s2598_s8 = inlined_call_operand.hbm [shape: f32[1,32], index: 8, kind: input, shape index: {}]   ;;  %s2599_s9 = inlined_call_operand.vmem [shape: f32[32,32], index: 9, kind: input, shape index: {}]   ;;  %s2600_s10 = inlined_call_operand.vmem [shape: f32[1,32], index: 10, kind: input, shape index: {}]   ;;  %s2601_s11 = inlined_call_operand.hbm [shape: f32[2,8,32], index: 11, kind: output, shape index: {}]  }
   0x1   :  { %2634 = sst [smem:[#allocation35_spill]] %s2591_s1 }
   0x2   :  { %2635 = sst [smem:[#allocation36_spill]] %s2593_s3 }
   0x3   :  { %2636 = sst [smem:[#allocation37_spill]] %s2594_s4 }
   0x4   :  { %2637 = sst [smem:[#allocation38_spill]] %s2596_s6 }
   0x5   :  { %2638 = sst [smem:[#allocation39_spill]] %s2597_s7 }
   0x6   :  { %2639 = sst [smem:[#allocation40_spill]] %s2599_s9 }
   0x7   :  { %2640 = sst [smem:[#allocation41_spill]] %s2600_s10 }
   0x8   :  { %2641 = sst [smem:[#allocation42_spill]] %s2601_s11 }
   0x9   :  { %16 = vsyncpa [#allocation8], 0 }
   0xa   :  { %18 = vsyncpa [#allocation8 + $0x1], 0 }
   0xb   :  { %19 = vsyncpa [#allocation11], 0 }
   0xc   :  { %21 = vsyncpa [#allocation11 + $0x1], 0 }
   0xd   :  { %22 = vsyncpa [#allocation14], 0 }
   0xe   :  { %23 = vsyncpa [#allocation17], 0 }
   0xf   :  { %24 = vsyncpa [#allocation9], 0 }
  0x10   :  { %26 = vsyncpa [#allocation9 + $0x1], 0  ;;  %s2114_s17 = smov 0   ;;  %s2116_s18 = smov 0  }
  0x11   :  { %s2118_s19 = smov 0   ;;  %s2120_s20 = smov 0  }
  0x12   :  { %s2122_s21 = smov 0   ;;  %s2124_s22 = smov 0  }
  0x13 LB: > { %2642 = sst [smem:[#allocation25_spill]] %s2015_s17  ;;  %s2145_s23 = sadd.s32 4294967295, %s2035_s22   ;;  %s2035_s22 = sphi %s2124_s22, %s32_s22   ;;  %s2031_s21 = sphi %s2122_s21, %s2699_s21   ;;  %s2027_s20 = sphi %s2120_s20, %s2698_s20   ;;  %s2023_s19 = sphi %s2118_s19, %s2694_s19   ;;  %s2019_s18 = sphi %s2116_s18, %s2697_s18   ;;  %s2015_s17 = sphi %s2114_s17, %s2696_s17  }
  0x14   : > { %2643 = sst [smem:[#allocation26_spill]] %s2023_s19  ;;  %s1431_s24 = sadd.s32 4294967294, %s2035_s22  }
  0x15   : > { %2644 = sst [smem:[#allocation27_spill]] %s2027_s20  ;;  %p73_p0 = scmp.ne.s32.totalorder %s2019_s18, %s2015_s17 }
  0x16   : > { %2645 = sst [smem:[#allocation28_spill]] %s2035_s22  ;;  %p2604_p1 = scmp.eq.s32.totalorder %s2145_s23, 0 }
  0x17   : > { %2646 = sst [smem:[#allocation29_spill]] %s2145_s23  ;;  %p329_p3 = scmp.eq.s32.totalorder %s1431_s24, 1 }
  0x18   : > { %p2154_p4 = por %p2604_p1, %p73_p0  ;;  %p1432_p5 = scmp.ge.s32.totalorder %s2035_s22, 1 }
  0x19   : > { %p2159_p6 = por %p329_p3, %p73_p0  ;;  %p336_p7 = scmp.lt.s32.totalorder %s2035_s22, 3 }
  0x1a   : > { %s2647_s25 = scalar_select %p2154_p4, 1, 0 }
  0x1b   : > { %s2649_s26 = scalar_select %p2159_p6, 1, 0 }
  0x1c   : > { %2648 = sst [smem:[#allocation30_spill]] %s2647_s25  ;;  %p2164_p8 = pnand %p1432_p5, %p336_p7 }
  0x1d   : > { %2650 = sst [smem:[#allocation31_spill]] %s2649_s26  ;;  %s2037_s28 = smov [#allocation13]  }
  0x1e   : > { %s2651_s27 = scalar_select %p2164_p8, 1, 0 }
  0x1f   : > { %s348_s29 = sshll.u32 %s2037_s28, 4  ;;  %p1627_p9 = pneg %p2164_p8  ;;  %s2168_s29 = int_to_ptr.vmem [resolvable:$true] %s348_s29 }
  0x20   : > { %s2038_s12 = smov [#allocation16]   ;;  %s2653_s3 = sld [smem:[#allocation36_spill]] }
  0x21   : > { %p2175_p11 = pnand %p1627_p9, %p2604_p1  ;;  %s380_s13 = sshll.u32 %s2038_s12, 4  ;;  %s2179_s13 = int_to_ptr.vmem [resolvable:$true] %s380_s13 }
  0x23   : > { %s2652_s30 = scalar_select %p2175_p11, 1, 0 }
  0x24   : > { %p2189_p13 = pneg %p2175_p11 }
  0x26   : > { %s1739_s16 = scalar_lea.hbm %s2653_s3, 512 }
  0x27   : > { %p1740_p12 = scmp.ne.s32.totalorder %s2653_s3, %s1739_s16  ;;  %p1746_p5 = scmp.lt.u32.totalorder %s1739_s16, %s2653_s3 }
  0x28   : > { %s2654_s26 = scalar_select %p2189_p13, 1, 0 }
  0x29   : > { %p1742_p0 = pnand %p2189_p13, %p1740_p12 }
  0x2b   : > { %p1743_p3 = pneg %p1742_p0 }
  0x2d   : > { %p1748_p7 = pnand %p1746_p5, %p1743_p3 }
  0x2f   : > { %1751 = shalt.err (!%p1748_p7)
}
  0x30   : > { %s1752_s14 = scalar_lea.vmem %s2168_s29, 512  ;;  %p1760_p2 = scmp.lt.s32.totalorder %s2168_s29, %s2168_s29 }
  0x31   : > { %p1753_p9 = scmp.ne.s32.totalorder %s2168_s29, %s1752_s14  ;;  %p1761_p6 = scmp.lt.s32.totalorder %s1752_s14, %s1752_s14 }
  0x33   : > { %p1755_p10 = pnand %p1753_p9, %p2189_p13  ;;  %p1762_p12 = por %p1761_p6, %p1760_p2 }
  0x35   : > { %p1756_p1 = pneg %p1755_p10 }
  0x37   : > { %p1763_p0 = pnand %p1762_p12, %p1756_p1 }
  0x39   : > { %1766 = shalt.err (!%p1763_p0)
}
  0x3a   : > { %s2607_s15 = smov 128   ;;  %s2609_s17 = smov 8  }
  0x3b   : > { %1630 = dma.hbm_to_vmem [thread:$0]  (!%p2175_p11), %s2653_s3, 512, %s2168_s29, [#allocation14], %s2607_s15, %s2607_s15, %s2609_s17  }
  0x3c   : > { %s2655_s7 = sld [smem:[#allocation39_spill]] }
  0x42   : > { %s1767_s14 = scalar_lea.hbm %s2655_s7, 512 }
  0x43   : > { %p1768_p1 = scmp.ne.s32.totalorder %s2655_s7, %s1767_s14  ;;  %p1774_p10 = scmp.lt.u32.totalorder %s1767_s14, %s2655_s7 }
  0x45   : > { %p1770_p2 = pnand %p1768_p1, %p2189_p13 }
  0x47   : > { %p1771_p6 = pneg %p1770_p2 }
  0x49   : > { %p1776_p3 = pnand %p1774_p10, %p1771_p6 }
  0x4b   : > { %1779 = shalt.err (!%p1776_p3)
}
  0x4c   : > { %s1780_s29 = scalar_lea.vmem %s2179_s13, 512  ;;  %p1788_p12 = scmp.lt.s32.totalorder %s2179_s13, %s2179_s13 }
  0x4d   : > { %p1781_p5 = scmp.ne.s32.totalorder %s2179_s13, %s1780_s29  ;;  %p1789_p0 = scmp.lt.s32.totalorder %s1780_s29, %s1780_s29 }
  0x4f   : > { %p1783_p7 = pnand %p1781_p5, %p2189_p13  ;;  %p1790_p1 = por %p1789_p0, %p1788_p12 }
  0x51   : > { %p1784_p9 = pneg %p1783_p7 }
  0x53   : > { %p1791_p2 = pnand %p1790_p1, %p1784_p9 }
  0x55   : > { %1794 = shalt.err (!%p1791_p2)
}
  0x56   : > { %1636 = dma.hbm_to_vmem [thread:$0]  (!%p2175_p11), %s2655_s7, 512, %s2179_s13, [#allocation17], %s2607_s15, %s2607_s15, %s2609_s17  }
  0x57   : > { %s51_s11 = sadd.s32 1, %s2031_s21  ;;  %s60_s20 = sadd.s32 1, %s2023_s19 }
  0x58   : > { %p53_p6 = scmp.ge.s32.totalorder %s51_s11, 2  ;;  %p67_p10 = scmp.ne.s32.totalorder %s2023_s19, %s2019_s18 }
  0x59   : > { %p68_p3 = scmp.eq.s32.totalorder %s2035_s22, 0  ;;  %p1658_p5 = scmp.lt.s32.totalorder %s2035_s22, 2 }
  0x5a   : > { %s2701_s11 = smov (%p53_p6, %s51_s11), 0  ;;  %p2657_p9 = scmp.eq.s32.totalorder %s2145_s23, 1 }
  0x5b   : > { %2656 = sst [smem:[#allocation32_spill]] %s2701_s11  ;;  %p69_p7 = por %p68_p3, %p67_p10 }
  0x5c   : > { %p2249_p12 = por %p2657_p9, %p67_p10  ;;  %s55_s24 = ssub.s32 %s2031_s21, %s2701_s11 }
  0x5d   : > { %s2256_s13 = sand.u32 1, %s2023_s19   ;;  %p58_p0 = scmp.eq.s32.totalorder %s55_s24, 0 }
  0x5e   : > { %s2658_s16 = scalar_select %p2249_p12, 1, 0 }
  0x5f   : > { %p2258_p1 = pnand %p1658_p5, %p69_p7  ;;  %s430_s12 = sand.u32 1, %s2035_s22  }
  0x60   : > { %2659 = sst [smem:[#allocation33_spill]] %s2658_s16  ;;  %s2612_s14 = sshll.u32 %s2256_s13, 4 }
  0x61   : > { %s2660_s28 = scalar_select %p2258_p1, 1, 0 }
  0x62   : > { %s2265_s29 = scalar_select %p58_p0, %s2023_s19, %s60_s20  }
  0x63   : > { %s2613_s9 = sshll.u32 %s2031_s21, 8  ;;  %s2662_s1 = sld [smem:[#allocation35_spill]] }
  0x64   : > { %2661 = sst [smem:[#allocation34_spill]] %s2265_s29  ;;  %s434_s24 = scalar_lea.vmem [#allocation10], %s2612_s14 }
  0x65   : > { %s443_s3 = sshll.u32 %s434_s24, 4  ;;  %s2279_s7 = scalar_lea.sflag [#allocation11], %s430_s12  ;;  %s2277_s3 = int_to_ptr.vmem [resolvable:$true] %s443_s3 }
  0x66   : > { %p2285_p6 = pneg %p2258_p1 }
  0x68   : > { %s2663_s11 = scalar_select %p2285_p6, 1, 0 }
  0x69   : > { %s2273_s17 = scalar_lea.hbm %s2662_s1, %s2613_s9  ;;  %s1800_s14 = scalar_lea.hbm %s2662_s1, 512 }
  0x6a   : > { %s1795_s20 = scalar_lea.hbm %s2273_s17, 256  ;;  %p1801_p5 = scmp.lt.u32.totalorder %s2273_s17, %s2662_s1 }
  0x6b   : > { %p1796_p2 = scmp.ne.s32.totalorder %s2273_s17, %s1795_s20  ;;  %p1802_p7 = scmp.lt.u32.totalorder %s1800_s14, %s1795_s20 }
  0x6c   : > { %p1804_p0 = scmp.lt.u32.totalorder %s1795_s20, %s2273_s17 }
  0x6d   : > { %p1798_p10 = pnand %p2285_p6, %p1796_p2  ;;  %p1803_p9 = por %p1802_p7, %p1801_p5 }
  0x6f   : > { %p1799_p3 = pneg %p1798_p10  ;;  %p1805_p12 = por %p1804_p0, %p1803_p9 }
  0x71   : > { %p1806_p4 = pnand %p1805_p12, %p1799_p3 }
  0x73   : > { %1809 = shalt.err (!%p1806_p4)
}
  0x74   : > { %s1810_s12 = scalar_lea.vmem %s2277_s3, 256  ;;  %s2041_s15 = smov [#allocation10]  }
  0x75   : > { %p1811_p2 = scmp.ne.s32.totalorder %s2277_s3, %s1810_s12  ;;  %s1815_s10 = sshll.u32 %s2041_s15, 4  ;;  %s1816_s10 = int_to_ptr.vmem [resolvable:$false] %s1815_s10 }
  0x76   : > { %s1817_s9 = scalar_lea.vmem %s1816_s10, 512  ;;  %p1818_p11 = scmp.lt.s32.totalorder %s2277_s3, %s1816_s10 }
  0x77   : > { %p1813_p10 = pnand %p1811_p2, %p2285_p6  ;;  %p1819_p13 = scmp.lt.s32.totalorder %s1817_s9, %s1810_s12 }
  0x79   : > { %p1814_p8 = pneg %p1813_p10  ;;  %p1820_p5 = por %p1819_p13, %p1818_p11 }
  0x7b   : > { %p1821_p7 = pnand %p1820_p5, %p1814_p8 }
  0x7d   : > { %1824 = shalt.err (!%p1821_p7)
}
  0x7e   : > { %s2664_s14 = smov 8   ;;  %s2665_s20 = smov 128  }
  0x7f   : > { %1646 = dma.hbm_to_vmem [thread:$0]  (!%p2258_p1), %s2273_s17, 256, %s2277_s3, %s2279_s7, %s2665_s20, %s2665_s20, %s2664_s14  }
  0x80   : > { %s2666_s24 = sshll.u32 %s2031_s21, 8  ;;  %s2667_s10 = sshll.u32 %s2256_s13, 4 }
  0x81   : > { %s2317_s12 = scalar_lea.hbm %s2592_s2, %s2666_s24  ;;  %s2321_s9 = scalar_lea.vmem [#allocation12], %s2667_s10 }
  0x82   : > { %s466_s29 = sshll.u32 %s2321_s9, 4  ;;  %s2042_s19 = smov [#allocation15]   ;;  %s2372_s29 = int_to_ptr.vmem [resolvable:$true] %s466_s29 }
  0x83   : > { %s364_s22 = sshll.u32 %s2042_s19, 4  ;;  %s2043_s16 = smov [#allocation18]   ;;  %s365_s22 = int_to_ptr.vmem [resolvable:$true] %s364_s22 }
  0x84   : > { %s394_s6 = sshll.u32 %s2043_s16, 4  ;;  %s1825_s3 = scalar_lea.hbm %s2595_s5, 512  ;;  %s395_s6 = int_to_ptr.vmem [resolvable:$true] %s394_s6 }
  0x85   : > { %p1826_p4 = scmp.ne.s32.totalorder %s2595_s5, %s1825_s3  ;;  %p2668_p8 = scmp.ne.s32.totalorder %s2654_s26, 0 }
  0x86   : > { %p1832_p12 = scmp.lt.u32.totalorder %s1825_s3, %s2595_s5 }
  0x87   : > { %p1828_p11 = pnand %p1826_p4, %p2668_p8 }
  0x89   : > { %p1829_p13 = pneg %p1828_p11 }
  0x8b   : > { %p1834_p3 = pnand %p1832_p12, %p1829_p13 }
  0x8d   : > { %1837 = shalt.err (!%p1834_p3)
}
  0x8e   : > { %s1838_s19 = scalar_lea.vmem %s365_s22, 512  ;;  %p1846_p10 = scmp.lt.s32.totalorder %s365_s22, %s365_s22 }
  0x8f   : > { %p1839_p9 = scmp.ne.s32.totalorder %s365_s22, %s1838_s19  ;;  %p1847_p5 = scmp.lt.s32.totalorder %s1838_s19, %s1838_s19 }
  0x91   : > { %p1841_p0 = pnand %p1839_p9, %p2668_p8  ;;  %p1848_p7 = por %p1847_p5, %p1846_p10 }
  0x93   : > { %p1842_p2 = pneg %p1841_p0 }
  0x95   : > { %p1849_p1 = pnand %p1848_p7, %p1842_p2 }
  0x97   : > { %1852 = shalt.err (!%p1849_p1)
}
  0x98   : > { %p2669_p4 = scmp.ne.s32.totalorder %s2652_s30, 0  ;;  %s1853_s15 = scalar_lea.hbm %s2598_s8, 16 }
  0x99   : > { %p1854_p11 = scmp.ne.s32.totalorder %s2598_s8, %s1853_s15  ;;  %p1860_p12 = scmp.lt.u32.totalorder %s1853_s15, %s2598_s8 }
  0x9a   : > { %1633 = dma.hbm_to_vmem [thread:$0]  (!%p2669_p4), %s2595_s5, 512, %s365_s22, [#allocation14], %s2665_s20, %s2665_s20, %s2664_s14  }
  0x9b   : > { %p1856_p1 = pnand %p1854_p11, %p2668_p8 }
  0x9d   : > { %p1857_p13 = pneg %p1856_p1 }
  0x9f   : > { %p1862_p3 = pnand %p1860_p12, %p1857_p13 }
  0xa1   : > { %1865 = shalt.err (!%p1862_p3)
}
  0xa2   : > { %s1866_s24 = scalar_lea.vmem %s395_s6, 16  ;;  %s1873_s22 = scalar_lea.vmem %s395_s6, 32 }
  0xa3   : > { %p1867_p9 = scmp.ne.s32.totalorder %s395_s6, %s1866_s24  ;;  %p1874_p10 = scmp.lt.s32.totalorder %s395_s6, %s395_s6 }
  0xa4   : > { %p1875_p5 = scmp.lt.s32.totalorder %s1873_s22, %s1866_s24 }
  0xa5   : > { %p1869_p0 = pnand %p1867_p9, %p2668_p8 }
  0xa6   : > { %p1876_p7 = por %p1875_p5, %p1874_p10 }
  0xa7   : > { %p1870_p2 = pneg %p1869_p0 }
  0xa9   : > { %p1877_p6 = pnand %p1876_p7, %p1870_p2 }
  0xab   : > { %1880 = shalt.err (!%p1877_p6)
}
  0xac   : > { %1639 = dma.hbm_to_vmem [thread:$0]  (!%p2669_p4), %s2598_s8, 16, %s395_s6, [#allocation17]  }
  0xad   : > { %s1438_s26 = sshll.u32 %s2256_s13, 3  ;;  %s1439_s23 = sshll.u32 %s2031_s21, 7 }
  0xae   : > { %s2368_s15 = scalar_lea.hbm %s2590_s0, %s1439_s23  ;;  %s415_s30 = scalar_lea.vmem [#allocation7], %s1438_s26 }
  0xaf   : > { %s423_s10 = sshll.u32 %s415_s30, 4  ;;  %s412_s3 = scalar_lea.sflag [#allocation8], %s2256_s13  ;;  %s424_s10 = int_to_ptr.vmem [resolvable:$true] %s423_s10 }
  0xb0   : > { %s1881_s17 = scalar_lea.hbm %s2368_s15, 128  ;;  %p2670_p8 = scmp.ne.s32.totalorder %s2663_s11, 0 }
  0xb1   : > { %p1882_p6 = scmp.ne.s32.totalorder %s2368_s15, %s1881_s17  ;;  %s1886_s24 = scalar_lea.hbm %s2590_s0, 256 }
  0xb2   : > { %p1887_p1 = scmp.lt.u32.totalorder %s2368_s15, %s2590_s0  ;;  %p1888_p13 = scmp.lt.u32.totalorder %s1886_s24, %s1881_s17 }
  0xb3   : > { %p1884_p4 = pnand %p1882_p6, %p2670_p8  ;;  %p1890_p3 = scmp.lt.u32.totalorder %s1881_s17, %s2368_s15 }
  0xb4   : > { %p1889_p12 = por %p1888_p13, %p1887_p1 }
  0xb5   : > { %p1885_p11 = pneg %p1884_p4 }
  0xb6   : > { %p1891_p9 = por %p1890_p3, %p1889_p12 }
  0xb8   : > { %p1892_p0 = pnand %p1891_p9, %p1885_p11 }
  0xba   : > { %1895 = shalt.err (!%p1892_p0)
}
  0xbb   : > { %s1896_s13 = scalar_lea.vmem %s424_s10, 128  ;;  %s2044_s19 = smov [#allocation7]  }
  0xbc   : > { %p1897_p2 = scmp.ne.s32.totalorder %s424_s10, %s1896_s13  ;;  %s1901_s4 = sshll.u32 %s2044_s19, 4  ;;  %s1902_s4 = int_to_ptr.vmem [resolvable:$false] %s1901_s4 }
  0xbd   : > { %s1903_s26 = scalar_lea.vmem %s1902_s4, 256  ;;  %p1904_p7 = scmp.lt.s32.totalorder %s424_s10, %s1902_s4 }
  0xbe   : > { %p1899_p10 = pnand %p1897_p2, %p2670_p8  ;;  %p1905_p6 = scmp.lt.s32.totalorder %s1903_s26, %s1896_s13 }
  0xc0   : > { %p1900_p5 = pneg %p1899_p10  ;;  %p1906_p4 = por %p1905_p6, %p1904_p7 }
  0xc2   : > { %p1907_p1 = pnand %p1906_p4, %p1900_p5 }
  0xc4   : > { %1910 = shalt.err (!%p1907_p1)
}
  0xc5   : > { %p2671_p13 = scmp.ne.s32.totalorder %s2660_s28, 0  ;;  %s1911_s23 = scalar_lea.hbm %s2317_s12, 256 }
  0xc6   : > { %p1912_p11 = scmp.ne.s32.totalorder %s2317_s12, %s1911_s23  ;;  %s1916_s30 = scalar_lea.hbm %s2592_s2, 512 }
  0xc7   : > { %1643 = dma.hbm_to_vmem [thread:$0]  (!%p2671_p13), %s2368_s15, 128, %s424_s10, %s412_s3  }
  0xc8   : > { %p1914_p12 = pnand %p1912_p11, %p2670_p8  ;;  %p1917_p9 = scmp.lt.u32.totalorder %s2317_s12, %s2592_s2 }
  0xc9   : > { %p1918_p0 = scmp.lt.u32.totalorder %s1916_s30, %s1911_s23  ;;  %p1920_p10 = scmp.lt.u32.totalorder %s1911_s23, %s2317_s12 }
  0xca   : > { %p1915_p3 = pneg %p1914_p12 }
  0xcb   : > { %p1919_p2 = por %p1918_p0, %p1917_p9 }
  0xcd   : > { %p1921_p5 = por %p1920_p10, %p1919_p2 }
  0xcf   : > { %p1922_p7 = pnand %p1921_p5, %p1915_p3 }
  0xd1   : > { %1925 = shalt.err (!%p1922_p7)
}
  0xd2   : > { %s1926_s15 = scalar_lea.vmem %s2372_s29, 256  ;;  %s2045_s10 = smov [#allocation12]  }
  0xd3   : > { %p1927_p6 = scmp.ne.s32.totalorder %s2372_s29, %s1926_s15  ;;  %s1931_s3 = sshll.u32 %s2045_s10, 4  ;;  %s1932_s3 = int_to_ptr.vmem [resolvable:$false] %s1931_s3 }
  0xd4   : > { %s1933_s1 = scalar_lea.vmem %s1932_s3, 512  ;;  %p1934_p11 = scmp.lt.s32.totalorder %s2372_s29, %s1932_s3 }
  0xd5   : > { %p1929_p4 = pnand %p1927_p6, %p2670_p8  ;;  %p1935_p12 = scmp.lt.s32.totalorder %s1933_s1, %s1926_s15 }
  0xd7   : > { %p1930_p1 = pneg %p1929_p4  ;;  %p1936_p9 = por %p1935_p12, %p1934_p11 }
  0xd9   : > { %p1937_p0 = pnand %p1936_p9, %p1930_p1 }
  0xdb   : > { %1940 = shalt.err (!%p1937_p0)
}
  0xdc   : > { %1649 = dma.hbm_to_vmem [thread:$0]  (!%p2671_p13), %s2317_s12, 256, %s2372_s29, %s2279_s7, %s2665_s20, %s2665_s20, %s2664_s14  }
  0xdd   : > { %p2672_p8 = scmp.ne.s32.totalorder %s2651_s27, 0 }
  0xde   : > { %s2673_s11 = sld [smem:[#allocation30_spill]] (!%p2672_p8)  ;;  %s2420_s24 = sand.u32 (!%p2672_p8), 1, %s2019_s18  }
  0xdf   : > { %478 = sbr.rel (%p2672_p8) target bundleno = 1746 (0x6d2), region = 64  ;;  %s1447_s9 = sshll.u32 (!%p2672_p8), %s2420_s24, 3 }
  0xe0   : > { %s481_s22 = scalar_lea.sflag (!%p2672_p8), [#allocation8], %s2420_s24  ;;  %s2426_s28 = scalar_lea.vmem (!%p2672_p8), [#allocation7], %s1447_s9 }
  0xe4   : > { %p2674_p3 = scmp.ne.s32.totalorder (!%p2672_p8), %s2673_s11, 0 }
  0xe6   : > { %1994 = dma.done.wait (%p2674_p3), %s481_s22, 128  }
  0xe7   : > { %1996 = vsyncadd (%p2674_p3), %s481_s22, 4294967168  ;;  %s2675_s7 = sld [smem:[#allocation29_spill]]  ;;  %s1448_s29 = sshll.u32 %s2420_s24, 4 }
  0xe8   : > { %s2434_s20 = scalar_lea.vmem [#allocation10], %s1448_s29 }
  0xed   : > { %s489_s27 = sand.u32 1, %s2675_s7  }
  0xee   : > { %s490_s14 = scalar_lea.sflag [#allocation11], %s489_s27 }
  0xef   : > { %1998 = dma.done.wait (%p2674_p3), %s490_s14, 512  }
  0xf0   : > { %2000 = vsyncadd (%p2674_p3), %s490_s14, 4294966784  ;;  %s2440_s12 = scalar_lea.vmem [#allocation12], %s1448_s29  ;;  %p2676_p13 = scmp.eq.s32.totalorder %s2675_s7, 0 }
  0xf2   : > { %2002 = dma.done.wait (%p2676_p13), [#allocation14], 1024   ;;  %p2677_p2 = pmov %p2676_p13 }
  0xf4   : > { %2004 = vsyncadd (%p2677_p2), [#allocation14], 4294966272  ;;  %p2678_p10 = pmov %p2677_p2 }
  0xf5   : > { %p2679_p5 = pmov %p2677_p2 }
  0xf6   : > { %2006 = dma.done.wait (%p2678_p10), [#allocation17], 528  }
  0xf7   : > { %2008 = vsyncadd (%p2679_p5), [#allocation17], 4294966768  ;;  %v2046_v0 = vmov 0.0|0.0   ;;  %vm2047_vm0 = vmmov 0   ;;  %v2048_v1 = vmov 0.0   ;;  %v575_v2 = vld [vmem:[#allocation13] sm:$0xff] }
  0xf8   : > { %1575 = vmatprep.subr.bf16.mxu0 %v2046_v0  ;;  %1515 = vmatprep.mubr.msk.f32.mxu0 %vm2047_vm0, %v2048_v1  ;;  %v576_v3 = vld [vmem:[#allocation13 + $0x8] sm:$0xff]  ;;  %v681_v4 = vld [vmem:[#allocation15] sm:$0xff]  ;;  %v577_v7 = vld [vmem:[#allocation13 + $0x10] sm:$0xff]  ;;  %vm586_vm1 = vcmask 261120   ;;  %vm676_vm2 = vcmask 130048   ;;  %s2680_s4 = sld [smem:[#allocation37_spill]] }
  0xf9   : > { %v1576_v5 = vpack.c.bf16 %v576_v3, %v575_v2  ;;  %v682_v6 = vld [vmem:[#allocation15 + $0x8] sm:$0xff]  ;;  %v578_v8 = vld [vmem:[#allocation13 + $0x18] sm:$0xff]  ;;  %v683_v10 = vld [vmem:[#allocation15 + $0x10] sm:$0xff]  ;;  %677 = vst.msk [vmem:[#allocation5] sm:$0xff] %vm676_vm2, %v2048_v1  ;;  %s2681_s25 = sld [smem:[#allocation38_spill]]  ;;  %vm661_vm3 = vcmask 125952  }
  0xfa   : > { %v1581_v9 = vpack.c.bf16 %v682_v6, %v681_v4  ;;  %v684_v11 = vld [vmem:[#allocation15 + $0x18] sm:$0xff]  ;;  %v1579_v12 = vpack.c.bf16 %v578_v8, %v577_v7  ;;  %v679_v14 = vld [vmem:[%s2434_s20] sm:$0xff]  ;;  %678 = vst.msk [vmem:[#allocation5 + $0x8] sm:$0xff] %vm676_vm2, %v2048_v1  ;;  %s2049_s16 = smov 112   ;;  %v778_v31 = vld [vmem:[#allocation16 + $0x8] sm:$0xff]  ;;  %vm671_vm4 = vcmask 7168  }
  0xfb   : > { %1577 = vmatpush3.bf16.msra.mxu0 %v1576_v5  ;;  %v1585_v13 = vpack.c.bf16 %v684_v11, %v683_v10  ;;  %1526 = vmatprep.mubr.msk.f32.mxu1 %vm586_vm1, %v679_v14  ;;  %v574_v15 = vld [vmem:[%s2426_s28] sm:$0xff]  ;;  %v777_v30 = vld [vmem:[#allocation16] sm:$0xff]  ;;  %v2050_v42 = vmov -inf   ;;  %674 = vst.msk [vmem:[#allocation4] sm:$0xff] %vm671_vm4, %v2048_v1  ;;  %675 = vst.msk [vmem:[#allocation4 + $0x8] sm:$0xff] %vm671_vm4, %v2048_v1  ;;  %v2051_v48 = vmov 0  }
  0xfc   : > { %1582 = vmatprep.subr.bf16.mxu1 %v1581_v9  ;;  %1578 = vmatprep.subr.bf16.mxu0 %v2046_v0  ;;  %v680_v16 = vld [vmem:[%s2434_s20 + $0x8] sm:$0xff]  ;;  %v779_v32 = vld [vmem:[#allocation16 + $0x10] sm:$0xff]  ;;  %v1589_v33 = vpack.c.bf16 %v778_v31, %v777_v30  ;;  %672 = vst.msk [vmem:[#allocation3] sm:$0xff] %vm671_vm4, %v2050_v42  ;;  %673 = vst.msk [vmem:[#allocation3 + $0x8] sm:$0xff] %vm671_vm4, %v2050_v42  ;;  %s2682_s6 = sld [smem:[#allocation40_spill]]  ;;  %s2683_s28 = sld [smem:[#allocation27_spill]] }
  0xfd   : > { %1584 = vmatpush3.bf16.msra.mxu1 %v1581_v9  ;;  %v780_v34 = vld [vmem:[#allocation16 + $0x18] sm:$0xff]  ;;  %v775_v35 = vld [vmem:[%s2440_s12] sm:$0xff]  ;;  %1725 = vset.pattern.permute.xlu0 %v2051_v48  ;;  %s2052_s7 = smov 16   ;;  %vm1157_vm5 = vcmask 261248   ;;  %s2684_s27 = sld [smem:[#allocation33_spill]] }
  0xfe   : > { %1586 = vmatprep.subr.bf16.mxu1 %v1585_v13  ;;  %v1455_v17 = vld [vmem:[%s2680_s4] ss:$0 sm:$0xff]  ;;  %v1593_v36 = vpack.c.bf16 %v780_v34, %v779_v32  ;;  %v776_v37 = vld [vmem:[%s2440_s12 + $0x8] sm:$0xff]  ;;  %1726 = vset.pattern.permute.xlu1 %v2051_v48  ;;  %v1461_v59 = vld [vmem:[#allocation18] ss:$0 sm:$0xff]  ;;  %s2685_s20 = sld [smem:[#allocation41_spill]] }
  0xff   : > { %1580 = vmatpush3.bf16.msra.mxu0 %v1579_v12  ;;  %v1458_v19 = vld [vmem:[%s2681_s25] ss:$0 sm:$0xff]  ;;  %s566_s13 = scalar_lea.vmem [#allocation19], %s1447_s9  ;;  %s2686_s23 = sld [smem:[#allocation42_spill]] }
 0x100   : > { %1590 = vmatprep.subr.bf16.mxu0 %v1589_v33  ;;  %s1260_s19 = sshll.u32 %s566_s13, 4  ;;  %s2053_s9 = smov [#allocation19]   ;;  %s2542_s19 = int_to_ptr.vmem [resolvable:$true] %s1260_s19 }
 0x101   : > { %1588 = vmatpush3.bf16.msra.mxu1 %v1585_v13  ;;  %s1941_s30 = scalar_lea.vmem %s2542_s19, 128  ;;  %s1945_s17 = sshll.u32 %s2053_s9, 4  ;;  %s1946_s17 = int_to_ptr.vmem [resolvable:$false] %s1945_s17 }
 0x102   : > { %1516 = vmatmul.mubr.msk.f32.vlgmr.msra.gmra.mrb[0].mxu0 %vm586_vm1, %v574_v15  ;;  %1540 = vmatprep.subr.bf16.mxu1 %v2048_v1  ;;  %v1065_v32 = vld [vmem:[#allocation4 + $0x8] sm:$0xff]  ;;  %s1471_s12 = sshll.u32 %s2683_s28, 7  ;;  %p1942_p7 = scmp.ne.s32.totalorder %s2542_s19, %s1941_s30 }
 0x103   : > { %1537 = vmatprep.mubr.msk.f32.mxu0 %vm586_vm1, %v775_v35  ;;  %1592 = vmatpush3.bf16.msra.mxu0 %v1589_v33  ;;  %v918_v54 = vld [vmem:[#allocation3] sm:$0xff]  ;;  %v1048_v2 = vld [vmem:[#allocation3 + $0x8] sm:$0xff]  ;;  %p2687_p6 = scmp.ne.s32.totalorder %s2684_s27, 0  ;;  %s1947_s15 = scalar_lea.vmem %s1946_s17, 256 }
 0x104   : > { %1527 = vmatmul.mubr.msk.f32.vlgmr.msra.gmra.mrb[0].mxu1 %vm586_vm1, %v680_v16  ;;  %1594 = vmatprep.subr.bf16.mxu0 %v1593_v36  ;;  %p1948_p11 = scmp.lt.s32.totalorder %s2542_s19, %s1946_s17  ;;  %p1949_p12 = scmp.lt.s32.totalorder %s1947_s15, %s1941_s30 }
 0x105   : > { %1542 = vmatprep.mubr.msk.bf16.mxu1 %vm2047_vm0, %v2048_v1  ;;  %s2540_s25 = scalar_lea.hbm %s2686_s23, %s1471_s12  ;;  %p1943_p4 = pnand %p1942_p7, %p2687_p6 }
 0x106   : > { %p1950_p9 = por %p1949_p12, %p1948_p11 }
 0x107   : > { %1596 = vmatpush3.bf16.msra.mxu0 %v1593_v36  ;;  %p1944_p1 = pneg %p1943_p4 }
 0x108   : > { %1546 = vmatprep.subr.bf16.mxu0 %v2048_v1 }
 0x109   : > { %p1951_p0 = pnand %p1950_p9, %p1944_p1 }
 0x10a   : > { %1538 = vmatmul.mubr.msk.f32.vlgmr.msra.gmra.mrb[2].mxu0 %vm586_vm1, %v776_v37  ;;  %v986_v37 = vld [vmem:[#allocation5] sm:$0xff] }
 0x10b   : > { %1548 = vmatprep.mubr.msk.bf16.mxu0 %vm2047_vm0, %v2048_v1 }
 0x1d5   : > { %v656_v18 = vpop.f32.mrb[0].mxu0 }
 0x1d6   : > { %v657_v20 = vadd.f32 %v1455_v17, %v656_v18  ;;  %v1517_v21 = vpop.f32.mrb[1].mxu0 }
 0x1d7   : > { %v1528_v22 = vpop.f32.mrb[0].mxu1 }
 0x1d8   : > { %v660_v23 = vpack.c.bf16 %v657_v20, %v657_v20  ;;  %v771_v24 = vadd.f32 %v1528_v22, %v1458_v19  ;;  %v765_v25 = vpop.f32.mrb[1].mxu1  ;;  %v934_v22 = vld [vmem:[#allocation4] sm:$0xff] }
 0x1d9   : > { %v766_v26 = vadd.f32 %v1458_v19, %v765_v25 }
 0x1da   : > { %662 = vst.msk [vmem:[#allocation2] sm:$0xf] %vm661_vm3, %v660_v23  ;;  %666 = vrot.lane.b32.xlu0 %v660_v23, %s2049_s16 }
 0x1db   : > { %v774_v27 = vpack.c.bf16 %v771_v24, %v766_v26 }
 0x1dd   : > { %v876_v28 = vsel %vm676_vm2, %v774_v27, 0  ;;  %v1539_v58 = vpop.f32.mrb[2].mxu0 }
 0x1de   : > { %1541 = vmatpush3.bf16.xpose.msra.mxu1 %v876_v28  ;;  %999 = vrot.lane.b32.xlu0 %v774_v27, %s2049_s16  ;;  %v866_v60 = vadd.f32 %v1539_v58, %v1461_v59  ;;  %v860_v61 = vpop.f32.mrb[3].mxu0 }
 0x1df   : > { %1552 = vmatprep.subr.bf16.mxu1 %v2048_v1  ;;  %v861_v62 = vadd.f32 %v1461_v59, %v860_v61 }
 0x1e1   : > { %v870_v29 = vld [vmem:[#allocation2] sm:$0xf]  ;;  %v869_v63 = vpack.c.bf16 %v866_v60, %v861_v62 }
 0x1e3   : > { %1547 = vmatpush3.bf16.msra.mxu0 %v869_v63 }
 0x1e4   : > { %1558 = vmatprep.subr.bf16.mxu0 %v2048_v1 }
 0x1e5   : > { %1543 = vmatmul.mubr.msk.bf16.vlgmr.msra.gmra.mrb[4].mxu1 %vm676_vm2, %v870_v29 }
 0x1e6   : > { %1554 = vmatprep.mubr.msk.bf16.mxu1 %vm2047_vm0, %v2048_v1 }
 0x24c   : > { %v667_v38 = vpop.permute.xlu0 %666 }
 0x24d   : > { %670 = vst.msk [vmem:[#allocation2 + $0x4] sm:$0xf] %vm661_vm3, %v667_v38 }
 0x250   : > { %v1000_v39 = vpop.permute.xlu0 %999 }
 0x251   : > { %v1005_v40 = vsel %vm676_vm2, %v1000_v39, 0 }
 0x252   : > { %1553 = vmatpush3.bf16.xpose.msra.mxu1 %v1005_v40 }
 0x253   : > { %1597 = vmatprep.subr.bf16.mxu1 %v2046_v0 }
 0x254   : > { %v997_v41 = vld [vmem:[#allocation2 + $0x4] sm:$0xf] }
 0x259   : > { %1555 = vmatmul.mubr.msk.bf16.vlgmr.msra.gmra.mrb[8].mxu1 %vm676_vm2, %v997_v41 }
 0x25a   : > { %1572 = vmatprep.mubr.msk.f32.mxu1 %vm2047_vm0, %v2048_v1 }
 0x2b8   : > { %v912_v43 = vpop.f32.mrb[4].mxu1 }
 0x2b9   : > { %v1544_v44 = vpop.f32.mrb[5].mxu1  ;;  %v919_v45 = vsel %vm676_vm2, %v912_v43, -inf }
 0x2ba   : > { %920 = vmax.xlane.f32.xlu1 %v919_v45  ;;  %v915_v46 = vpop.f32.mrb[6].mxu1 }
 0x2bb   : > { %v1545_v47 = vpop.f32.mrb[7].mxu1  ;;  %v1121_v46 = vld [vmem:[#allocation5 + $0x8] sm:$0xff] }
 0x32c   : > { %v1041_v49 = vpop.f32.mrb[8].mxu1 }
 0x32d   : > { %v1556_v50 = vpop.f32.mrb[9].mxu1  ;;  %v1049_v51 = vsel %vm676_vm2, %v1041_v49, -inf }
 0x32e   : > { %1050 = vmax.xlane.f32.xlu1 %v1049_v51  ;;  %v1044_v52 = vpop.f32.mrb[10].mxu1 }
 0x32f   : > { %v1557_v53 = vpop.f32.mrb[11].mxu1 }
 0x330   : > { %v1160_v53 = vld [vmem:[%s2682_s6] sm:$0xff] }
 0x347   : > { %v921_v55 = vpop.xlane.xlu1 %920 }
 0x348   : > { %v922_v56 = vmax.f32 %v918_v54, %v921_v55 }
 0x34a   : > { %v923_v57 = vsub.f32 %v918_v54, %v922_v56  ;;  %995 = vst.msk [vmem:[#allocation3] sm:$0xff] %vm671_vm4, %v922_v56  ;;  %928 = vperm.xlu0 %1725, %v922_v56   ;;  %v1161_v54 = vld [vmem:[%s2682_s6 + $0x8] sm:$0xff]  ;;  %v1162_v56 = vld [vmem:[%s2682_s6 + $0x10] sm:$0xff] }
 0x34b   : > { %v1598_v55 = vpack.c.bf16 %v1161_v54, %v1160_v53 }
 0x34c   : > { %v924_v20 = vmul.f32 1.442695, %v923_v57  ;;  %v1163_v57 = vld [vmem:[%s2682_s6 + $0x18] sm:$0xff] }
 0x34d   : > { %1599 = vmatpush3.bf16.msra.mxu1 %v1598_v55  ;;  %v1601_v58 = vpack.c.bf16 %v1163_v57, %v1162_v56 }
 0x34e   : > { %1074 = vrot.lane.b32.xlu0 %v869_v63, %s2049_s16  ;;  %1600 = vmatprep.subr.bf16.mxu1 %v2046_v0  ;;  %s1246_s16 = scalar_lea.sflag [#allocation9], %s2420_s24 }
 0x351   : > { %1602 = vmatpush3.bf16.msra.mxu1 %v1601_v58 }
 0x3bb   : > { %v1051_v3 = vpop.xlane.xlu1 %1050 }
 0x3bc   : > { %v1052_v4 = vmax.f32 %v1048_v2, %v1051_v3 }
 0x3be   : > { %v1053_v5 = vsub.f32 %v1048_v2, %v1052_v4  ;;  %1130 = vst.msk [vmem:[#allocation3 + $0x8] sm:$0xff] %vm671_vm4, %v1052_v4  ;;  %1058 = vperm.xlu1 %1726, %v1052_v4   ;;  %v1468_v2 = vld [vmem:[%s2685_s20] ss:$0 sm:$0xff] }
 0x3c0   : > { %v1054_v19 = vmul.f32 1.442695, %v1053_v5 }
 0x3c9   : > { %v929_v6 = vpop.permute.xlu0 %928 }
 0x3ca   : > { %v931_v7 = vsub.f32 %v912_v43, %v929_v6 }
 0x3cc   : > { %v932_v8 = vmul.f32 1.442695, %v931_v7 }
 0x3cd   : > { %v1075_v11 = vpop.permute.xlu0 %1074 }
 0x3ce   : > { %1727 = vpow2.f32 %v932_v8 }
 0x3d8   : > { %v1728_v9 = vpop.eup %1727 }
 0x3d9   : > { %v942_v10 = vpack.c.bf16 %v1728_v9, %v1728_v9  ;;  %v936_v12 = vsel %vm676_vm2, %v1728_v9, 0.0 }
 0x3db   : > { %1549 = vmatmul.mubr.msk.bf16.vlgmr.msra.gmra.mrb[4].mxu0 %vm676_vm2, %v942_v10 }
 0x3dc   : > { %1559 = vmatpush3.bf16.msra.mxu0 %v1075_v11  ;;  %1560 = vmatprep.mubr.msk.bf16.mxu0 %vm2047_vm0, %v2048_v1 }
 0x3e2   : > { %937 = vadd.xlane.f32.xlu1 %v936_v12 }
 0x43d   : > { %v1059_v13 = vpop.permute.xlu1 %1058 }
 0x43e   : > { %v1061_v14 = vsub.f32 %v1041_v49, %v1059_v13 }
 0x440   : > { %v1062_v15 = vmul.f32 1.442695, %v1061_v14 }
 0x442   : > { %1729 = vpow2.f32 %v1062_v15 }
 0x443   : > { %1731 = vpow2.f32 %v1054_v19 }
 0x444   : > { %1733 = vpow2.f32 %v924_v20 }
 0x44c   : > { %v1730_v16 = vpop.eup %1729 }
 0x44d   : > { %v1067_v17 = vsel %vm676_vm2, %v1730_v16, 0.0  ;;  %v1072_v18 = vpack.c.bf16 %v1730_v16, %v1730_v16  ;;  %v1732_v21 = vpop.eup %1731 }
 0x44e   : > { %1068 = vadd.xlane.f32.xlu0 %v1067_v17  ;;  %v1734_v1 = vpop.eup %1733  ;;  %v1066_v33 = vmul.f32 %v1732_v21, %v1065_v32 }
 0x44f   : > { %1561 = vmatmul.mubr.msk.bf16.vlgmr.msra.gmra.mrb[8].mxu0 %vm676_vm2, %v1072_v18  ;;  %v935_v23 = vmul.f32 %v1734_v1, %v934_v22 }
 0x464   : > { %1124 = vperm.xlu0 %1725, %v1732_v21  }
 0x468   : > { %989 = vperm.xlu0 %1725, %v1734_v1  }
 0x46f   : > { %v938_v24 = vpop.xlane.xlu1 %937 }
 0x470   : > { %v939_v25 = vadd.f32 %v938_v24, %v935_v23 }
 0x472   : > { %941 = vst.msk [vmem:[#allocation4] sm:$0xff] %vm671_vm4, %v939_v25 }
 0x479   : > { %v1134_v26 = vld [vmem:[#allocation4] sm:$0xff] }
 0x47a   : > { %1735 = vrcp.f32 %v1134_v26 }
 0x484   : > { %v1736_v27 = vpop.eup %1735 }
 0x485   : > { %1139 = vperm.xlu0 %1725, %v1736_v27  }
 0x4ae   : > { %v980_v28 = vpop.f32.mrb[4].mxu0 }
 0x4af   : > { %v1550_v29 = vpop.f32.mrb[5].mxu0 }
 0x4b0   : > { %v983_v30 = vpop.f32.mrb[6].mxu0 }
 0x4b1   : > { %v1551_v31 = vpop.f32.mrb[7].mxu0 }
 0x4db   : > { %v1069_v34 = vpop.xlane.xlu0 %1068 }
 0x4dc   : > { %v1070_v35 = vadd.f32 %v1069_v34, %v1066_v33 }
 0x4de   : > { %1071 = vst.msk [vmem:[#allocation4 + $0x8] sm:$0xff] %vm671_vm4, %v1070_v35 }
 0x4e3   : > { %v1125_v36 = vpop.permute.xlu0 %1124 }
 0x4e4   : > { %v1127_v47 = vmul.f32 %v1125_v36, %v1121_v46 }
 0x4e5   : > { %v1144_v38 = vld [vmem:[#allocation4 + $0x8] sm:$0xff] }
 0x4e6   : > { %1737 = vrcp.f32 %v1144_v38 }
 0x4e7   : > { %v990_v39 = vpop.permute.xlu0 %989 }
 0x4e8   : > { %v992_v40 = vmul.f32 %v990_v39, %v986_v37 }
 0x4ea   : > { %v993_v41 = vadd.f32 %v992_v40, %v980_v28 }
 0x4ec   : > { %994 = vst.msk [vmem:[#allocation5] sm:$0xff] %vm676_vm2, %v993_v41 }
 0x4f0   : > { %v1738_v42 = vpop.eup %1737 }
 0x4f1   : > { %1149 = vperm.xlu1 %1726, %v1738_v42  }
 0x4f3   : > { %v1136_v44 = vld [vmem:[#allocation5] sm:$0xff] }
 0x504   : > { %v1140_v43 = vpop.permute.xlu0 %1139 }
 0x505   : > { %v1142_v45 = vmul.f32 %v1140_v43, %v1136_v44 }
 0x507   : > { %1143 = vst.msk [vmem:[#allocation6] sm:$0xff] %vm676_vm2, %v1142_v45 }
 0x522   : > { %v1114_v48 = vpop.f32.mrb[8].mxu0 }
 0x523   : > { %v1128_v49 = vadd.f32 %v1127_v47, %v1114_v48  ;;  %v1562_v50 = vpop.f32.mrb[9].mxu0 }
 0x524   : > { %v1117_v51 = vpop.f32.mrb[10].mxu0 }
 0x525   : > { %1129 = vst.msk [vmem:[#allocation5 + $0x8] sm:$0xff] %vm676_vm2, %v1128_v49  ;;  %v1563_v52 = vpop.f32.mrb[11].mxu0 }
 0x52c   : > { %v1146_v60 = vld [vmem:[#allocation5 + $0x8] sm:$0xff] }
 0x570   : > { %v1150_v59 = vpop.permute.xlu1 %1149 }
 0x571   : > { %v1152_v61 = vmul.f32 %v1150_v59, %v1146_v60 }
 0x573   : > { %1154 = vrot.lane.b32.xlu1 %v1152_v61, %s2052_s7 }
 0x5e5   : > { %v1155_v62 = vpop.permute.xlu1 %1154 }
 0x5e6   : > { %1158 = vst.msk [vmem:[#allocation6] sm:$0xff] %vm1157_vm5, %v1155_v62 }
 0x5ed   : > { %v1159_v63 = vld [vmem:[#allocation6] sm:$0xff] }
 0x5ee   : > { %1573 = vmatmul.mubr.msk.f32.vlgmr.msra.gmra.mrb[2].mxu1 %vm586_vm1, %v1159_v63 }
 0x6c1   : > { %v1240_v0 = vpop.f32.mrb[2].mxu1 }
 0x6c2   : > { %v1241_v3 = vadd.f32 %v1468_v2, %v1240_v0  ;;  %v1574_v4 = vpop.f32.mrb[3].mxu1 }
 0x6c4   : > { %1244 = vst.msk [vmem:[%s566_s13] sm:$0xff] %vm586_vm1, %v1241_v3 }
 0x6c5   : > { %1954 = shalt.err (!%p1951_p0)
}
 0x6c6   : > { %s1955_s24 = scalar_lea.hbm %s2540_s25, 128  ;;  %s1959_s1 = scalar_lea.hbm %s2686_s23, 256 }
 0x6c7   : > { %p1956_p8 = scmp.ne.s32.totalorder %s2540_s25, %s1955_s24  ;;  %p1960_p2 = scmp.lt.u32.totalorder %s2540_s25, %s2686_s23 }
 0x6c8   : > { %p1961_p10 = scmp.lt.u32.totalorder %s1959_s1, %s1955_s24  ;;  %p1963_p7 = scmp.lt.u32.totalorder %s1955_s24, %s2540_s25 }
 0x6c9   : > { %p1957_p3 = pnand %p1956_p8, %p2687_p6 }
 0x6ca   : > { %p1962_p5 = por %p1961_p10, %p1960_p2 }
 0x6cb   : > { %p1958_p13 = pneg %p1957_p3 }
 0x6cc   : > { %p1964_p4 = por %p1963_p7, %p1962_p5 }
 0x6ce   : > { %p1965_p1 = pnand %p1964_p4, %p1958_p13 }
 0x6d0   : > { %1968 = shalt.err (!%p1965_p1)
}
 0x6d1   : > { %1625 = dma.vmem_to_hbm [thread:$0]  (%p2687_p6), %s2542_s19, 128, %s2540_s25, %s1246_s16  }
 0x6d2 PF: > { %s2688_s28 = sld [smem:[#allocation25_spill]]  ;;  %s2689_s7 = sld [smem:[#allocation31_spill]] }
 0x6d3   : > { %s2690_s29 = sld [smem:[#allocation28_spill]] }
 0x6d8   : > { %s1272_s14 = sand.u32 1, %s2688_s28   ;;  %p2691_p11 = scmp.ne.s32.totalorder %s2689_s7, 0 }
 0x6d9   : > { %p2692_p12 = scmp.ge.s32.totalorder %s2690_s29, 2  ;;  %s1273_s20 = scalar_lea.sflag [#allocation9], %s1272_s14 }
 0x6db   : > { %p1651_p9 = pnand %p2692_p12, %p2691_p11 }
 0x6dd   : > { %2010 = dma.done.wait (!%p1651_p9), %s1273_s20, 128  }
 0x6de   : > { %2012 = vsyncadd (!%p1651_p9), %s1273_s20, 4294967168  ;;  %s32_s22 = sadd.s32 1, %s2690_s29   ;;  %s2693_s12 = sld [smem:[#allocation26_spill]] }
 0x6df   : > { %p29_p0 = scmp.ge.s32.totalorder %s32_s22, 4   ;;  %s2694_s19 = sld [smem:[#allocation34_spill]] }
 0x6e0   : > { %s2695_s27 = sld [smem:[#allocation32_spill]]  ;;  %s2696_s17 = smov %s2019_s18 }
 0x6e1   : > { %s2698_s20 = smov %s2031_s21  ;;  %31 = sbr.rel (!%p29_p0) target bundleno = 19 (0x13), region = 162 }
 0x6e4   : > { %s2697_s18 = smov %s2693_s12 }
 0x6e6   : > { %s2699_s21 = smov %s2695_s27 }
 0x6e8   :  { %1278 = vsyncpa [#allocation8], 1 }
 0x6e9   :  { %1280 = vsyncpa [#allocation8 + $0x1], 1 }
 0x6ea   :  { %1281 = vsyncpa [#allocation11], 1 }
 0x6eb   :  { %1283 = vsyncpa [#allocation11 + $0x1], 1 }
 0x6ec   :  { %1284 = vsyncpa [#allocation14], 1 }
 0x6ed   :  { %1285 = vsyncpa [#allocation17], 1 }
 0x6ee   :  { %1286 = vsyncpa [#allocation9], 1 }
 0x6ef   :  { %1288 = vsyncpa [#allocation9 + $0x1], 1 }

</bundles_post_ra>
